<compile_context>
chip_gen: v7x
topology: tpu7x:2x2x1
jax: 0.10.0
libtpu: 0.0.40
codegen_flags: <defaults>
</compile_context>

<pallas_src>
import jax
import jax.numpy as jnp
from jax.experimental import pallas as pl
from jax.experimental.pallas import tpu as pltpu


# ----------------------------------------------------------------------------
# Fused kernel: stacked LSTM recurrence over a time block + final FC+sigmoid.
# ----------------------------------------------------------------------------
def _make_stacked_lstm_kernel(n_layers, hidden_dim, time_block, unroll):
    H = hidden_dim

    def kernel(*refs):
        # ---- unpack refs (inputs, outputs, scratch in pallas_call order) ----
        x_ref = refs[0]                                   # (Tb, B, in_dim) f32
        layer_refs = refs[1:1 + 3 * n_layers]             # (wih, whh, bias) * L
        h0_ref = refs[1 + 3 * n_layers]                   # (L, B, H)
        c0_ref = refs[2 + 3 * n_layers]                   # (L, B, H)
        fcw_ref = refs[3 + 3 * n_layers]                  # (H, out) bf16
        fcb_ref = refs[4 + 3 * n_layers]                  # (1, out) f32
        o_base = 5 + 3 * n_layers
        sig_ref = refs[o_base]                            # (B, out)
        hT_ref = refs[o_base + 1]                         # (L, B, H)
        cT_ref = refs[o_base + 2]                         # (L, B, H)
        h_sc = refs[o_base + 3]                           # (L, B, H) f32 scratch
        c_sc = refs[o_base + 4]                           # (L, B, H) f32 scratch

        tb = pl.program_id(0)
        B = x_ref.shape[1]

        @pl.when(tb == 0)
        def _():
            h_sc[...] = h0_ref[...].astype(jnp.float32)
            c_sc[...] = c0_ref[...].astype(jnp.float32)

        # Hoist weight loads and bias broadcasts out of the time loop
        # (JAX does not CSE broadcast_in_dim inside the unrolled loop).
        wihs = [layer_refs[3 * l][...] for l in range(n_layers)]
        whhs = [layer_refs[3 * l + 1][...] for l in range(n_layers)]
        biases = [jnp.broadcast_to(layer_refs[3 * l + 2][...], (B, 4 * H))
                  for l in range(n_layers)]

        def cell(inp, h, c, wih, whh, bias):
            # Gates in f32 (v5e has no bf16 VPU/EUP); matmul operands bf16.
            gates = (jnp.dot(inp.astype(wih.dtype), wih,
                             preferred_element_type=jnp.float32)
                     + jnp.dot(h.astype(whh.dtype), whh,
                               preferred_element_type=jnp.float32)
                     + bias)
            # PyTorch gate order: i, f, g, o.
            i_g = jax.nn.sigmoid(gates[:, 0:H])
            f_g = jax.nn.sigmoid(gates[:, H:2 * H])
            g_g = jnp.tanh(gates[:, 2 * H:3 * H])
            o_g = jax.nn.sigmoid(gates[:, 3 * H:4 * H])
            c_new = f_g * c + i_g * g_g
            h_new = o_g * jnp.tanh(c_new)
            return h_new, c_new

        def step(t, carry):
            hs, cs = carry
            inp = x_ref[t].astype(jnp.float32)            # (B, in_dim)
            new_hs, new_cs = [], []
            for l in range(n_layers):                     # wavefront over layers
                h_new, c_new = cell(inp, hs[l], cs[l],
                                    wihs[l], whhs[l], biases[l])
                new_hs.append(h_new)
                new_cs.append(c_new)
                inp = h_new
                # TODO(synk): inter-layer dropout (p=0.5) omitted — identity in eval.
            return tuple(new_hs), tuple(new_cs)

        init = (tuple(h_sc[l] for l in range(n_layers)),
                tuple(c_sc[l] for l in range(n_layers)))
        hs, cs = jax.lax.fori_loop(0, time_block, step, init, unroll=unroll)

        # Carry across time blocks + final-state outputs (output blocks have a
        # constant index map, so they stay VMEM-resident and are flushed once
        # after the last grid step — the last block's values win).
        for l in range(n_layers):
            h_sc[l] = hs[l]
            c_sc[l] = cs[l]
            hT_ref[l] = hs[l].astype(hT_ref.dtype)
            cT_ref[l] = cs[l].astype(cT_ref.dtype)

        # Final FC + sigmoid on the LAST layer's hidden state only.
        # Identical to fc over all batch*seq rows followed by
        # view(batch, -1)[:, -1], but a factor-seq cheaper.
        logits = (jnp.dot(hs[-1].astype(fcw_ref.dtype), fcw_ref[...],
                          preferred_element_type=jnp.float32)
                  + fcb_ref[...])
        sig_ref[...] = jax.nn.sigmoid(logits)

    return kernel


def _time_tile(seq):
    for t in (64, 32, 16, 8):
        if seq % t == 0:
            return t
    return seq


def stacked_lstm_forward(x, layer_params, h0, c0, fc_w_t, fc_b):
    """x: (seq, batch, E) f32 time-major embeddings.
    layer_params: list of {w_ih_t:(in,4H) bf16, w_hh_t:(H,4H) bf16, bias:(1,4H) f32}.
    h0, c0: (L, B, H) f32.  fc_w_t: (H, out) bf16.  fc_b: (1, out) f32.
    Returns (sig:(B,out) f32, h_n:(L,B,H) f32, c_n:(L,B,H) f32)."""
    seq, batch, in_dim = x.shape
    L, _, H = h0.shape
    out_size = fc_w_t.shape[-1]
    Tb = _time_tile(seq)
    n_blocks = seq // Tb

    in_specs = [pl.BlockSpec((Tb, batch, in_dim), lambda tb: (tb, 0, 0))]
    flat_weights = []
    for lp in layer_params:
        in_specs += [
            pl.BlockSpec(lp["w_ih_t"].shape, lambda tb: (0, 0)),
            pl.BlockSpec(lp["w_hh_t"].shape, lambda tb: (0, 0)),
            pl.BlockSpec(lp["bias"].shape, lambda tb: (0, 0)),
        ]
        flat_weights += [lp["w_ih_t"], lp["w_hh_t"], lp["bias"]]
    in_specs += [
        pl.BlockSpec((L, batch, H), lambda tb: (0, 0, 0)),
        pl.BlockSpec((L, batch, H), lambda tb: (0, 0, 0)),
        pl.BlockSpec(fc_w_t.shape, lambda tb: (0, 0)),
        pl.BlockSpec(fc_b.shape, lambda tb: (0, 0)),
    ]
    out_specs = (
        pl.BlockSpec((batch, out_size), lambda tb: (0, 0)),
        pl.BlockSpec((L, batch, H), lambda tb: (0, 0, 0)),
        pl.BlockSpec((L, batch, H), lambda tb: (0, 0, 0)),
    )

    kernel = _make_stacked_lstm_kernel(L, H, Tb, unroll=(Tb <= 8))

    grid_spec = pltpu.PrefetchScalarGridSpec(
        num_scalar_prefetch=0,
        grid=(n_blocks,),
        in_specs=in_specs,
        out_specs=out_specs,
        scratch_shapes=[pltpu.VMEM((L, batch, H), jnp.float32),
                        pltpu.VMEM((L, batch, H), jnp.float32)],
    )
    return pl.pallas_call(
        kernel,
        out_shape=(jax.ShapeDtypeStruct((batch, out_size), jnp.float32),
                   jax.ShapeDtypeStruct((L, batch, H), jnp.float32),
                   jax.ShapeDtypeStruct((L, batch, H), jnp.float32)),
        grid_spec=grid_spec,
        compiler_params=pltpu.CompilerParams(
            dimension_semantics=("arbitrary",)),   # time is a carried recurrence
    )(x, *flat_weights, h0, c0, fc_w_t, fc_b)


# ----------------------------------------------------------------------------
# Parameter init (deterministic, PyTorch-style U(-1/sqrt(H), 1/sqrt(H))).
# Matmul weights stored in bf16; biases / accumulation in f32.
# ----------------------------------------------------------------------------
def init_params(key, vocab_size, output_size, embedding_dim, hidden_dim,
                n_layers):
    keys = jax.random.split(key, 2 + 4 * n_layers)
    kidx = 0
    params = {}

    params["embedding"] = jax.random.normal(
        keys[kidx], (vocab_size, embedding_dim), jnp.float32); kidx += 1

    bound = 1.0 / float(hidden_dim) ** 0.5
    layers = []
    for layer in range(n_layers):
        in_dim = embedding_dim if layer == 0 else hidden_dim
        w_ih = jax.random.uniform(keys[kidx], (4 * hidden_dim, in_dim),
                                  jnp.float32, -bound, bound); kidx += 1
        w_hh = jax.random.uniform(keys[kidx], (4 * hidden_dim, hidden_dim),
                                  jnp.float32, -bound, bound); kidx += 1
        b_ih = jax.random.uniform(keys[kidx], (4 * hidden_dim,),
                                  jnp.float32, -bound, bound); kidx += 1
        b_hh = jax.random.uniform(keys[kidx], (4 * hidden_dim,),
                                  jnp.float32, -bound, bound); kidx += 1
        layers.append({
            "w_ih_t": w_ih.T.astype(jnp.bfloat16),             # (in_dim, 4H)
            "w_hh_t": w_hh.T.astype(jnp.bfloat16),             # (H, 4H)
            "bias": (b_ih + b_hh).reshape(1, 4 * hidden_dim),  # (1, 4H) f32
        })
    params["lstm"] = layers

    params["fc_w_t"] = jax.random.uniform(
        keys[-1], (hidden_dim, output_size), jnp.float32,
        -bound, bound).astype(jnp.bfloat16)
    params["fc_b"] = jnp.zeros((1, output_size), jnp.float32)
    return params


# ----------------------------------------------------------------------------
# Forward pass (mirrors the implied PyTorch Net.forward).
# ----------------------------------------------------------------------------
@jax.jit
def net_forward(params, nn_input, hidden):
    """nn_input: (batch, seq) int32 tokens; hidden: (h0, c0) each (L, B, H)."""
    h0_all, c0_all = hidden

    # Embedding lookup directly in time-major layout (seq, batch, E); only the
    # small int index array is transposed, never the float activations.
    x = params["embedding"][nn_input.T]                   # (seq, batch, E) f32

    sig, h_n, c_n = stacked_lstm_forward(
        x, params["lstm"], h0_all, c0_all, params["fc_w_t"], params["fc_b"])

    # dropout (eval: identity) already accounted for; take the last "feature"
    # of sig (== sig_out.view(batch, -1)[:, -1] in the reference).
    sig_out = sig[:, -1]                                  # (batch,)
    return sig_out, (h_n, c_n)


# ----------------------------------------------------------------------------
# Pure-JAX reference (same bf16 weights, f32 math) for correctness checking.
# ----------------------------------------------------------------------------
def reference_forward(params, nn_input, hidden):
    h_all, c_all = hidden
    x = params["embedding"][nn_input.T]                   # (seq, batch, E)
    H = h_all.shape[-1]
    hs, cs = [], []
    for layer, lp in enumerate(params["lstm"]):
        h = h_all[layer]
        c = c_all[layer]
        ys = []
        for t in range(x.shape[0]):
            gates = (jnp.dot(x[t].astype(jnp.bfloat16), lp["w_ih_t"],
                             preferred_element_type=jnp.float32)
                     + jnp.dot(h.astype(jnp.bfloat16), lp["w_hh_t"],
                               preferred_element_type=jnp.float32)
                     + lp["bias"])
            i_g = jax.nn.sigmoid(gates[:, 0:H])
            f_g = jax.nn.sigmoid(gates[:, H:2 * H])
            g_g = jnp.tanh(gates[:, 2 * H:3 * H])
            o_g = jax.nn.sigmoid(gates[:, 3 * H:4 * H])
            c = f_g * c + i_g * g_g
            h = o_g * jnp.tanh(c)
            ys.append(h)
        hs.append(h)
        cs.append(c)
        x = jnp.stack(ys, axis=0)
    sig = jax.nn.sigmoid(
        jnp.dot(hs[-1].astype(jnp.bfloat16), params["fc_w_t"],
                preferred_element_type=jnp.float32) + params["fc_b"])
    return sig[:, -1], (jnp.stack(hs, 0), jnp.stack(cs, 0))


if __name__ == "__main__":
    vocab_size = 32
    output_size = 1
    embedding_dim = 16
    hidden_dim = 32
    n_layers = 2
    batch = 2
    seq = 8

    key = jax.random.PRNGKey(0)
    pkey, xkey = jax.random.split(key)

    params = init_params(pkey, vocab_size, output_size, embedding_dim,
                         hidden_dim, n_layers)
    nn_input = jax.random.randint(xkey, (batch, seq), 0, vocab_size,
                                  dtype=jnp.int32)
    hidden = (jnp.zeros((n_layers, batch, hidden_dim), jnp.float32),
              jnp.zeros((n_layers, batch, hidden_dim), jnp.float32))

    sig_out, (h_n, c_n) = net_forward(params, nn_input, hidden)
    jax.block_until_ready((sig_out, h_n, c_n))

    assert sig_out.shape == (batch,)
    assert h_n.shape == (n_layers, batch, hidden_dim)
    assert c_n.shape == (n_layers, batch, hidden_dim)
    assert bool(jnp.all(jnp.isfinite(sig_out)))

    # Correctness vs pure-JAX reference using identical (bf16) weights.
    ref_sig, (ref_h, ref_c) = reference_forward(params, nn_input, hidden)
    assert bool(jnp.allclose(sig_out, ref_sig, atol=2e-2, rtol=2e-2))
    assert bool(jnp.allclose(h_n, ref_h, atol=2e-2, rtol=2e-2))
    assert bool(jnp.allclose(c_n, ref_c, atol=2e-2, rtol=2e-2))

    print("KERNEL_OK")
</pallas_src>

<mosaic_0001>
module attributes {stable_mosaic.version = 11 : i64} {
  func.func @kernel(%arg0: i32, %arg1: memref<8x2x16xf32, #tpu.memory_space<vmem>>, %arg2: memref<16x128xbf16, #tpu.memory_space<vmem>>, %arg3: memref<32x128xbf16, #tpu.memory_space<vmem>>, %arg4: memref<1x128xf32, #tpu.memory_space<vmem>>, %arg5: memref<32x128xbf16, #tpu.memory_space<vmem>>, %arg6: memref<32x128xbf16, #tpu.memory_space<vmem>>, %arg7: memref<1x128xf32, #tpu.memory_space<vmem>>, %arg8: memref<2x2x32xf32, #tpu.memory_space<vmem>>, %arg9: memref<2x2x32xf32, #tpu.memory_space<vmem>>, %arg10: memref<32x1xbf16, #tpu.memory_space<vmem>>, %arg11: memref<1x1xf32, #tpu.memory_space<vmem>>, %arg12: memref<2x1xf32, #tpu.memory_space<vmem>>, %arg13: memref<2x2x32xf32, #tpu.memory_space<vmem>>, %arg14: memref<2x2x32xf32, #tpu.memory_space<vmem>>, %arg15: memref<2x2x32xf32, #tpu.memory_space<vmem>>, %arg16: memref<2x2x32xf32, #tpu.memory_space<vmem>>) attributes {dimension_semantics = [#tpu.dimension_semantics<arbitrary>], iteration_bounds = array<i64: 1>, scalar_prefetch = 0 : i64, scratch_operands = 2 : i64, tpu.core_type = #tpu.core_type<tc>, window_params = [{transform_indices = @transform_0, window_bounds = array<i64: 8, 2, 16>}, {pipeline_mode = #tpu.pipeline_mode<synchronous>, transform_indices = @transform_1, window_bounds = array<i64: 16, 128>}, {pipeline_mode = #tpu.pipeline_mode<synchronous>, transform_indices = @transform_2, window_bounds = array<i64: 32, 128>}, {pipeline_mode = #tpu.pipeline_mode<synchronous>, transform_indices = @transform_3, window_bounds = array<i64: 1, 128>}, {pipeline_mode = #tpu.pipeline_mode<synchronous>, transform_indices = @transform_4, window_bounds = array<i64: 32, 128>}, {pipeline_mode = #tpu.pipeline_mode<synchronous>, transform_indices = @transform_5, window_bounds = array<i64: 32, 128>}, {pipeline_mode = #tpu.pipeline_mode<synchronous>, transform_indices = @transform_6, window_bounds = array<i64: 1, 128>}, {pipeline_mode = #tpu.pipeline_mode<synchronous>, transform_indices = @transform_7, window_bounds = array<i64: 2, 2, 32>}, {pipeline_mode = #tpu.pipeline_mode<synchronous>, transform_indices = @transform_8, window_bounds = array<i64: 2, 2, 32>}, {pipeline_mode = #tpu.pipeline_mode<synchronous>, transform_indices = @transform_9, window_bounds = array<i64: 32, 1>}, {pipeline_mode = #tpu.pipeline_mode<synchronous>, transform_indices = @transform_10, window_bounds = array<i64: 1, 1>}, {pipeline_mode = #tpu.pipeline_mode<synchronous>, transform_indices = @transform_11, window_bounds = array<i64: 2, 1>}, {pipeline_mode = #tpu.pipeline_mode<synchronous>, transform_indices = @transform_12, window_bounds = array<i64: 2, 2, 32>}, {pipeline_mode = #tpu.pipeline_mode<synchronous>, transform_indices = @transform_13, window_bounds = array<i64: 2, 2, 32>}]} {
    %c0_i32 = arith.constant 0 : i32
    %0 = arith.cmpi eq, %arg0, %c0_i32 : i32
    %1 = arith.extui %0 : i1 to i32
    %c0_i32_0 = arith.constant 0 : i32
    %2 = arith.cmpi ne, %1, %c0_i32_0 : i32
    scf.if %2 {
      %c0_151 = arith.constant 0 : index
      %c0_152 = arith.constant 0 : index
      %c0_153 = arith.constant 0 : index
      %577 = vector.load %arg8[%c0_151, %c0_152, %c0_153] : memref<2x2x32xf32, #tpu.memory_space<vmem>>, vector<2x2x32xf32>
      %c0_154 = arith.constant 0 : index
      %c0_155 = arith.constant 0 : index
      %c0_156 = arith.constant 0 : index
      %578 = vector.load %arg15[%c0_154, %c0_155, %c0_156] : memref<2x2x32xf32, #tpu.memory_space<vmem>>, vector<2x2x32xf32>
      tpu.vector_store %arg15[%c0_154, %c0_155, %c0_156], %577 {strides = array<i32>} : memref<2x2x32xf32, #tpu.memory_space<vmem>>, vector<2x2x32xf32>,
      %c0_157 = arith.constant 0 : index
      %c0_158 = arith.constant 0 : index
      %c0_159 = arith.constant 0 : index
      %579 = vector.load %arg9[%c0_157, %c0_158, %c0_159] : memref<2x2x32xf32, #tpu.memory_space<vmem>>, vector<2x2x32xf32>
      %c0_160 = arith.constant 0 : index
      %c0_161 = arith.constant 0 : index
      %c0_162 = arith.constant 0 : index
      %580 = vector.load %arg16[%c0_160, %c0_161, %c0_162] : memref<2x2x32xf32, #tpu.memory_space<vmem>>, vector<2x2x32xf32>
      tpu.vector_store %arg16[%c0_160, %c0_161, %c0_162], %579 {strides = array<i32>} : memref<2x2x32xf32, #tpu.memory_space<vmem>>, vector<2x2x32xf32>,
    } else {
    }
    %c0 = arith.constant 0 : index
    %c0_1 = arith.constant 0 : index
    %3 = vector.load %arg2[%c0, %c0_1] : memref<16x128xbf16, #tpu.memory_space<vmem>>, vector<16x128xbf16>
    %c0_2 = arith.constant 0 : index
    %c0_3 = arith.constant 0 : index
    %4 = vector.load %arg5[%c0_2, %c0_3] : memref<32x128xbf16, #tpu.memory_space<vmem>>, vector<32x128xbf16>
    %c0_4 = arith.constant 0 : index
    %c0_5 = arith.constant 0 : index
    %5 = vector.load %arg3[%c0_4, %c0_5] : memref<32x128xbf16, #tpu.memory_space<vmem>>, vector<32x128xbf16>
    %c0_6 = arith.constant 0 : index
    %c0_7 = arith.constant 0 : index
    %6 = vector.load %arg6[%c0_6, %c0_7] : memref<32x128xbf16, #tpu.memory_space<vmem>>, vector<32x128xbf16>
    %c0_8 = arith.constant 0 : index
    %c0_9 = arith.constant 0 : index
    %7 = vector.load %arg4[%c0_8, %c0_9] : memref<1x128xf32, #tpu.memory_space<vmem>>, vector<1x128xf32>
    %8 = vector.shape_cast %7 : vector<1x128xf32> to vector<1x128xf32>
    %9 = vector.broadcast %8 : vector<1x128xf32> to vector<2x128xf32>
    %c0_10 = arith.constant 0 : index
    %c0_11 = arith.constant 0 : index
    %10 = vector.load %arg7[%c0_10, %c0_11] : memref<1x128xf32, #tpu.memory_space<vmem>>, vector<1x128xf32>
    %11 = vector.shape_cast %10 : vector<1x128xf32> to vector<1x128xf32>
    %12 = vector.broadcast %11 : vector<1x128xf32> to vector<2x128xf32>
    %c0_12 = arith.constant 0 : index
    %c0_13 = arith.constant 0 : index
    %c0_14 = arith.constant 0 : index
    %13 = vector.load %arg15[%c0_12, %c0_13, %c0_14] : memref<2x2x32xf32, #tpu.memory_space<vmem>>, vector<1x2x32xf32>
    %14 = vector.shape_cast %13 : vector<1x2x32xf32> to vector<2x32xf32>
    %c1 = arith.constant 1 : index
    %c0_15 = arith.constant 0 : index
    %c0_16 = arith.constant 0 : index
    %15 = vector.load %arg15[%c1, %c0_15, %c0_16] : memref<2x2x32xf32, #tpu.memory_space<vmem>>, vector<1x2x32xf32>
    %16 = vector.shape_cast %15 : vector<1x2x32xf32> to vector<2x32xf32>
    %c0_17 = arith.constant 0 : index
    %c0_18 = arith.constant 0 : index
    %c0_19 = arith.constant 0 : index
    %17 = vector.load %arg16[%c0_17, %c0_18, %c0_19] : memref<2x2x32xf32, #tpu.memory_space<vmem>>, vector<1x2x32xf32>
    %18 = vector.shape_cast %17 : vector<1x2x32xf32> to vector<2x32xf32>
    %c1_20 = arith.constant 1 : index
    %c0_21 = arith.constant 0 : index
    %c0_22 = arith.constant 0 : index
    %19 = vector.load %arg16[%c1_20, %c0_21, %c0_22] : memref<2x2x32xf32, #tpu.memory_space<vmem>>, vector<1x2x32xf32>
    %20 = vector.shape_cast %19 : vector<1x2x32xf32> to vector<2x32xf32>
    %c0_i32_23 = arith.constant 0 : i32
    %21 = arith.index_cast %c0_i32_23 : i32 to index
    %c0_24 = arith.constant 0 : index
    %c0_25 = arith.constant 0 : index
    %22 = vector.load %arg1[%21, %c0_24, %c0_25] : memref<8x2x16xf32, #tpu.memory_space<vmem>>, vector<1x2x16xf32>
    %23 = vector.shape_cast %22 : vector<1x2x16xf32> to vector<2x16xf32>
    %24 = arith.truncf %23 : vector<2x16xf32> to vector<2x16xbf16>
    %cst = arith.constant dense<0.000000e+00> : vector<2x128xf32>
    %25 = tpu.matmul %24, %3, %cst {dimension_numbers = #tpu.dot_dimension_numbers<[1], [0], [0], [1], [0, 0, 1, 1], [], []>} : vector<2x16xbf16>, vector<16x128xbf16>, vector<2x128xf32> -> vector<2x128xf32>
    %26 = arith.truncf %14 : vector<2x32xf32> to vector<2x32xbf16>
    %cst_26 = arith.constant dense<0.000000e+00> : vector<2x128xf32>
    %27 = tpu.matmul %26, %5, %cst_26 {dimension_numbers = #tpu.dot_dimension_numbers<[1], [0], [0], [1], [0, 0, 1, 1], [], []>} : vector<2x32xbf16>, vector<32x128xbf16>, vector<2x128xf32> -> vector<2x128xf32>
    %28 = arith.addf %25, %27 : vector<2x128xf32>
    %29 = arith.addf %28, %9 : vector<2x128xf32>
    %30 = vector.extract_strided_slice %29 {offsets = [0, 0], sizes = [2, 32], strides = [1, 1]} : vector<2x128xf32> to vector<2x32xf32>
    %31 = arith.negf %30 : vector<2x32xf32>
    %32 = math.exp %31 : vector<2x32xf32>
    %cst_27 = arith.constant 1.000000e+00 : f32
    %33 = vector.broadcast %cst_27 : f32 to vector<2x32xf32>
    %34 = arith.addf %33, %32 : vector<2x32xf32>
    %35 = arith.divf %33, %34 : vector<2x32xf32>
    %36 = vector.extract_strided_slice %29 {offsets = [0, 32], sizes = [2, 32], strides = [1, 1]} : vector<2x128xf32> to vector<2x32xf32>
    %37 = arith.negf %36 : vector<2x32xf32>
    %38 = math.exp %37 : vector<2x32xf32>
    %cst_28 = arith.constant 1.000000e+00 : f32
    %39 = vector.broadcast %cst_28 : f32 to vector<2x32xf32>
    %40 = arith.addf %39, %38 : vector<2x32xf32>
    %41 = arith.divf %39, %40 : vector<2x32xf32>
    %42 = vector.extract_strided_slice %29 {offsets = [0, 64], sizes = [2, 32], strides = [1, 1]} : vector<2x128xf32> to vector<2x32xf32>
    %43 = math.tanh %42 : vector<2x32xf32>
    %44 = vector.extract_strided_slice %29 {offsets = [0, 96], sizes = [2, 32], strides = [1, 1]} : vector<2x128xf32> to vector<2x32xf32>
    %45 = arith.negf %44 : vector<2x32xf32>
    %46 = math.exp %45 : vector<2x32xf32>
    %cst_29 = arith.constant 1.000000e+00 : f32
    %47 = vector.broadcast %cst_29 : f32 to vector<2x32xf32>
    %48 = arith.addf %47, %46 : vector<2x32xf32>
    %49 = arith.divf %47, %48 : vector<2x32xf32>
    %50 = arith.mulf %41, %18 : vector<2x32xf32>
    %51 = arith.mulf %35, %43 : vector<2x32xf32>
    %52 = arith.addf %50, %51 : vector<2x32xf32>
    %53 = math.tanh %52 : vector<2x32xf32>
    %54 = arith.mulf %49, %53 : vector<2x32xf32>
    %55 = arith.truncf %54 : vector<2x32xf32> to vector<2x32xbf16>
    %cst_30 = arith.constant dense<0.000000e+00> : vector<2x128xf32>
    %56 = tpu.matmul %55, %4, %cst_30 {dimension_numbers = #tpu.dot_dimension_numbers<[1], [0], [0], [1], [0, 0, 1, 1], [], []>} : vector<2x32xbf16>, vector<32x128xbf16>, vector<2x128xf32> -> vector<2x128xf32>
    %57 = arith.truncf %16 : vector<2x32xf32> to vector<2x32xbf16>
    %cst_31 = arith.constant dense<0.000000e+00> : vector<2x128xf32>
    %58 = tpu.matmul %57, %6, %cst_31 {dimension_numbers = #tpu.dot_dimension_numbers<[1], [0], [0], [1], [0, 0, 1, 1], [], []>} : vector<2x32xbf16>, vector<32x128xbf16>, vector<2x128xf32> -> vector<2x128xf32>
    %59 = arith.addf %56, %58 : vector<2x128xf32>
    %60 = arith.addf %59, %12 : vector<2x128xf32>
    %61 = vector.extract_strided_slice %60 {offsets = [0, 0], sizes = [2, 32], strides = [1, 1]} : vector<2x128xf32> to vector<2x32xf32>
    %62 = arith.negf %61 : vector<2x32xf32>
    %63 = math.exp %62 : vector<2x32xf32>
    %cst_32 = arith.constant 1.000000e+00 : f32
    %64 = vector.broadcast %cst_32 : f32 to vector<2x32xf32>
    %65 = arith.addf %64, %63 : vector<2x32xf32>
    %66 = arith.divf %64, %65 : vector<2x32xf32>
    %67 = vector.extract_strided_slice %60 {offsets = [0, 32], sizes = [2, 32], strides = [1, 1]} : vector<2x128xf32> to vector<2x32xf32>
    %68 = arith.negf %67 : vector<2x32xf32>
    %69 = math.exp %68 : vector<2x32xf32>
    %cst_33 = arith.constant 1.000000e+00 : f32
    %70 = vector.broadcast %cst_33 : f32 to vector<2x32xf32>
    %71 = arith.addf %70, %69 : vector<2x32xf32>
    %72 = arith.divf %70, %71 : vector<2x32xf32>
    %73 = vector.extract_strided_slice %60 {offsets = [0, 64], sizes = [2, 32], strides = [1, 1]} : vector<2x128xf32> to vector<2x32xf32>
    %74 = math.tanh %73 : vector<2x32xf32>
    %75 = vector.extract_strided_slice %60 {offsets = [0, 96], sizes = [2, 32], strides = [1, 1]} : vector<2x128xf32> to vector<2x32xf32>
    %76 = arith.negf %75 : vector<2x32xf32>
    %77 = math.exp %76 : vector<2x32xf32>
    %cst_34 = arith.constant 1.000000e+00 : f32
    %78 = vector.broadcast %cst_34 : f32 to vector<2x32xf32>
    %79 = arith.addf %78, %77 : vector<2x32xf32>
    %80 = arith.divf %78, %79 : vector<2x32xf32>
    %81 = arith.mulf %72, %20 : vector<2x32xf32>
    %82 = arith.mulf %66, %74 : vector<2x32xf32>
    %83 = arith.addf %81, %82 : vector<2x32xf32>
    %84 = math.tanh %83 : vector<2x32xf32>
    %85 = arith.mulf %80, %84 : vector<2x32xf32>
    %c1_i32 = arith.constant 1 : i32
    %86 = arith.index_cast %c1_i32 : i32 to index
    %c0_35 = arith.constant 0 : index
    %c0_36 = arith.constant 0 : index
    %87 = vector.load %arg1[%86, %c0_35, %c0_36] : memref<8x2x16xf32, #tpu.memory_space<vmem>>, vector<1x2x16xf32>
    %88 = vector.shape_cast %87 : vector<1x2x16xf32> to vector<2x16xf32>
    %89 = arith.truncf %88 : vector<2x16xf32> to vector<2x16xbf16>
    %cst_37 = arith.constant dense<0.000000e+00> : vector<2x128xf32>
    %90 = tpu.matmul %89, %3, %cst_37 {dimension_numbers = #tpu.dot_dimension_numbers<[1], [0], [0], [1], [0, 0, 1, 1], [], []>} : vector<2x16xbf16>, vector<16x128xbf16>, vector<2x128xf32> -> vector<2x128xf32>
    %91 = arith.truncf %54 : vector<2x32xf32> to vector<2x32xbf16>
    %cst_38 = arith.constant dense<0.000000e+00> : vector<2x128xf32>
    %92 = tpu.matmul %91, %5, %cst_38 {dimension_numbers = #tpu.dot_dimension_numbers<[1], [0], [0], [1], [0, 0, 1, 1], [], []>} : vector<2x32xbf16>, vector<32x128xbf16>, vector<2x128xf32> -> vector<2x128xf32>
    %93 = arith.addf %90, %92 : vector<2x128xf32>
    %94 = arith.addf %93, %9 : vector<2x128xf32>
    %95 = vector.extract_strided_slice %94 {offsets = [0, 0], sizes = [2, 32], strides = [1, 1]} : vector<2x128xf32> to vector<2x32xf32>
    %96 = arith.negf %95 : vector<2x32xf32>
    %97 = math.exp %96 : vector<2x32xf32>
    %cst_39 = arith.constant 1.000000e+00 : f32
    %98 = vector.broadcast %cst_39 : f32 to vector<2x32xf32>
    %99 = arith.addf %98, %97 : vector<2x32xf32>
    %100 = arith.divf %98, %99 : vector<2x32xf32>
    %101 = vector.extract_strided_slice %94 {offsets = [0, 32], sizes = [2, 32], strides = [1, 1]} : vector<2x128xf32> to vector<2x32xf32>
    %102 = arith.negf %101 : vector<2x32xf32>
    %103 = math.exp %102 : vector<2x32xf32>
    %cst_40 = arith.constant 1.000000e+00 : f32
    %104 = vector.broadcast %cst_40 : f32 to vector<2x32xf32>
    %105 = arith.addf %104, %103 : vector<2x32xf32>
    %106 = arith.divf %104, %105 : vector<2x32xf32>
    %107 = vector.extract_strided_slice %94 {offsets = [0, 64], sizes = [2, 32], strides = [1, 1]} : vector<2x128xf32> to vector<2x32xf32>
    %108 = math.tanh %107 : vector<2x32xf32>
    %109 = vector.extract_strided_slice %94 {offsets = [0, 96], sizes = [2, 32], strides = [1, 1]} : vector<2x128xf32> to vector<2x32xf32>
    %110 = arith.negf %109 : vector<2x32xf32>
    %111 = math.exp %110 : vector<2x32xf32>
    %cst_41 = arith.constant 1.000000e+00 : f32
    %112 = vector.broadcast %cst_41 : f32 to vector<2x32xf32>
    %113 = arith.addf %112, %111 : vector<2x32xf32>
    %114 = arith.divf %112, %113 : vector<2x32xf32>
    %115 = arith.mulf %106, %52 : vector<2x32xf32>
    %116 = arith.mulf %100, %108 : vector<2x32xf32>
    %117 = arith.addf %115, %116 : vector<2x32xf32>
    %118 = math.tanh %117 : vector<2x32xf32>
    %119 = arith.mulf %114, %118 : vector<2x32xf32>
    %120 = arith.truncf %119 : vector<2x32xf32> to vector<2x32xbf16>
    %cst_42 = arith.constant dense<0.000000e+00> : vector<2x128xf32>
    %121 = tpu.matmul %120, %4, %cst_42 {dimension_numbers = #tpu.dot_dimension_numbers<[1], [0], [0], [1], [0, 0, 1, 1], [], []>} : vector<2x32xbf16>, vector<32x128xbf16>, vector<2x128xf32> -> vector<2x128xf32>
    %122 = arith.truncf %85 : vector<2x32xf32> to vector<2x32xbf16>
    %cst_43 = arith.constant dense<0.000000e+00> : vector<2x128xf32>
    %123 = tpu.matmul %122, %6, %cst_43 {dimension_numbers = #tpu.dot_dimension_numbers<[1], [0], [0], [1], [0, 0, 1, 1], [], []>} : vector<2x32xbf16>, vector<32x128xbf16>, vector<2x128xf32> -> vector<2x128xf32>
    %124 = arith.addf %121, %123 : vector<2x128xf32>
    %125 = arith.addf %124, %12 : vector<2x128xf32>
    %126 = vector.extract_strided_slice %125 {offsets = [0, 0], sizes = [2, 32], strides = [1, 1]} : vector<2x128xf32> to vector<2x32xf32>
    %127 = arith.negf %126 : vector<2x32xf32>
    %128 = math.exp %127 : vector<2x32xf32>
    %cst_44 = arith.constant 1.000000e+00 : f32
    %129 = vector.broadcast %cst_44 : f32 to vector<2x32xf32>
    %130 = arith.addf %129, %128 : vector<2x32xf32>
    %131 = arith.divf %129, %130 : vector<2x32xf32>
    %132 = vector.extract_strided_slice %125 {offsets = [0, 32], sizes = [2, 32], strides = [1, 1]} : vector<2x128xf32> to vector<2x32xf32>
    %133 = arith.negf %132 : vector<2x32xf32>
    %134 = math.exp %133 : vector<2x32xf32>
    %cst_45 = arith.constant 1.000000e+00 : f32
    %135 = vector.broadcast %cst_45 : f32 to vector<2x32xf32>
    %136 = arith.addf %135, %134 : vector<2x32xf32>
    %137 = arith.divf %135, %136 : vector<2x32xf32>
    %138 = vector.extract_strided_slice %125 {offsets = [0, 64], sizes = [2, 32], strides = [1, 1]} : vector<2x128xf32> to vector<2x32xf32>
    %139 = math.tanh %138 : vector<2x32xf32>
    %140 = vector.extract_strided_slice %125 {offsets = [0, 96], sizes = [2, 32], strides = [1, 1]} : vector<2x128xf32> to vector<2x32xf32>
    %141 = arith.negf %140 : vector<2x32xf32>
    %142 = math.exp %141 : vector<2x32xf32>
    %cst_46 = arith.constant 1.000000e+00 : f32
    %143 = vector.broadcast %cst_46 : f32 to vector<2x32xf32>
    %144 = arith.addf %143, %142 : vector<2x32xf32>
    %145 = arith.divf %143, %144 : vector<2x32xf32>
    %146 = arith.mulf %137, %83 : vector<2x32xf32>
    %147 = arith.mulf %131, %139 : vector<2x32xf32>
    %148 = arith.addf %146, %147 : vector<2x32xf32>
    %149 = math.tanh %148 : vector<2x32xf32>
    %150 = arith.mulf %145, %149 : vector<2x32xf32>
    %c2_i32 = arith.constant 2 : i32
    %151 = arith.index_cast %c2_i32 : i32 to index
    %c0_47 = arith.constant 0 : index
    %c0_48 = arith.constant 0 : index
    %152 = vector.load %arg1[%151, %c0_47, %c0_48] : memref<8x2x16xf32, #tpu.memory_space<vmem>>, vector<1x2x16xf32>
    %153 = vector.shape_cast %152 : vector<1x2x16xf32> to vector<2x16xf32>
    %154 = arith.truncf %153 : vector<2x16xf32> to vector<2x16xbf16>
    %cst_49 = arith.constant dense<0.000000e+00> : vector<2x128xf32>
    %155 = tpu.matmul %154, %3, %cst_49 {dimension_numbers = #tpu.dot_dimension_numbers<[1], [0], [0], [1], [0, 0, 1, 1], [], []>} : vector<2x16xbf16>, vector<16x128xbf16>, vector<2x128xf32> -> vector<2x128xf32>
    %156 = arith.truncf %119 : vector<2x32xf32> to vector<2x32xbf16>
    %cst_50 = arith.constant dense<0.000000e+00> : vector<2x128xf32>
    %157 = tpu.matmul %156, %5, %cst_50 {dimension_numbers = #tpu.dot_dimension_numbers<[1], [0], [0], [1], [0, 0, 1, 1], [], []>} : vector<2x32xbf16>, vector<32x128xbf16>, vector<2x128xf32> -> vector<2x128xf32>
    %158 = arith.addf %155, %157 : vector<2x128xf32>
    %159 = arith.addf %158, %9 : vector<2x128xf32>
    %160 = vector.extract_strided_slice %159 {offsets = [0, 0], sizes = [2, 32], strides = [1, 1]} : vector<2x128xf32> to vector<2x32xf32>
    %161 = arith.negf %160 : vector<2x32xf32>
    %162 = math.exp %161 : vector<2x32xf32>
    %cst_51 = arith.constant 1.000000e+00 : f32
    %163 = vector.broadcast %cst_51 : f32 to vector<2x32xf32>
    %164 = arith.addf %163, %162 : vector<2x32xf32>
    %165 = arith.divf %163, %164 : vector<2x32xf32>
    %166 = vector.extract_strided_slice %159 {offsets = [0, 32], sizes = [2, 32], strides = [1, 1]} : vector<2x128xf32> to vector<2x32xf32>
    %167 = arith.negf %166 : vector<2x32xf32>
    %168 = math.exp %167 : vector<2x32xf32>
    %cst_52 = arith.constant 1.000000e+00 : f32
    %169 = vector.broadcast %cst_52 : f32 to vector<2x32xf32>
    %170 = arith.addf %169, %168 : vector<2x32xf32>
    %171 = arith.divf %169, %170 : vector<2x32xf32>
    %172 = vector.extract_strided_slice %159 {offsets = [0, 64], sizes = [2, 32], strides = [1, 1]} : vector<2x128xf32> to vector<2x32xf32>
    %173 = math.tanh %172 : vector<2x32xf32>
    %174 = vector.extract_strided_slice %159 {offsets = [0, 96], sizes = [2, 32], strides = [1, 1]} : vector<2x128xf32> to vector<2x32xf32>
    %175 = arith.negf %174 : vector<2x32xf32>
    %176 = math.exp %175 : vector<2x32xf32>
    %cst_53 = arith.constant 1.000000e+00 : f32
    %177 = vector.broadcast %cst_53 : f32 to vector<2x32xf32>
    %178 = arith.addf %177, %176 : vector<2x32xf32>
    %179 = arith.divf %177, %178 : vector<2x32xf32>
    %180 = arith.mulf %171, %117 : vector<2x32xf32>
    %181 = arith.mulf %165, %173 : vector<2x32xf32>
    %182 = arith.addf %180, %181 : vector<2x32xf32>
    %183 = math.tanh %182 : vector<2x32xf32>
    %184 = arith.mulf %179, %183 : vector<2x32xf32>
    %185 = arith.truncf %184 : vector<2x32xf32> to vector<2x32xbf16>
    %cst_54 = arith.constant dense<0.000000e+00> : vector<2x128xf32>
    %186 = tpu.matmul %185, %4, %cst_54 {dimension_numbers = #tpu.dot_dimension_numbers<[1], [0], [0], [1], [0, 0, 1, 1], [], []>} : vector<2x32xbf16>, vector<32x128xbf16>, vector<2x128xf32> -> vector<2x128xf32>
    %187 = arith.truncf %150 : vector<2x32xf32> to vector<2x32xbf16>
    %cst_55 = arith.constant dense<0.000000e+00> : vector<2x128xf32>
    %188 = tpu.matmul %187, %6, %cst_55 {dimension_numbers = #tpu.dot_dimension_numbers<[1], [0], [0], [1], [0, 0, 1, 1], [], []>} : vector<2x32xbf16>, vector<32x128xbf16>, vector<2x128xf32> -> vector<2x128xf32>
    %189 = arith.addf %186, %188 : vector<2x128xf32>
    %190 = arith.addf %189, %12 : vector<2x128xf32>
    %191 = vector.extract_strided_slice %190 {offsets = [0, 0], sizes = [2, 32], strides = [1, 1]} : vector<2x128xf32> to vector<2x32xf32>
    %192 = arith.negf %191 : vector<2x32xf32>
    %193 = math.exp %192 : vector<2x32xf32>
    %cst_56 = arith.constant 1.000000e+00 : f32
    %194 = vector.broadcast %cst_56 : f32 to vector<2x32xf32>
    %195 = arith.addf %194, %193 : vector<2x32xf32>
    %196 = arith.divf %194, %195 : vector<2x32xf32>
    %197 = vector.extract_strided_slice %190 {offsets = [0, 32], sizes = [2, 32], strides = [1, 1]} : vector<2x128xf32> to vector<2x32xf32>
    %198 = arith.negf %197 : vector<2x32xf32>
    %199 = math.exp %198 : vector<2x32xf32>
    %cst_57 = arith.constant 1.000000e+00 : f32
    %200 = vector.broadcast %cst_57 : f32 to vector<2x32xf32>
    %201 = arith.addf %200, %199 : vector<2x32xf32>
    %202 = arith.divf %200, %201 : vector<2x32xf32>
    %203 = vector.extract_strided_slice %190 {offsets = [0, 64], sizes = [2, 32], strides = [1, 1]} : vector<2x128xf32> to vector<2x32xf32>
    %204 = math.tanh %203 : vector<2x32xf32>
    %205 = vector.extract_strided_slice %190 {offsets = [0, 96], sizes = [2, 32], strides = [1, 1]} : vector<2x128xf32> to vector<2x32xf32>
    %206 = arith.negf %205 : vector<2x32xf32>
    %207 = math.exp %206 : vector<2x32xf32>
    %cst_58 = arith.constant 1.000000e+00 : f32
    %208 = vector.broadcast %cst_58 : f32 to vector<2x32xf32>
    %209 = arith.addf %208, %207 : vector<2x32xf32>
    %210 = arith.divf %208, %209 : vector<2x32xf32>
    %211 = arith.mulf %202, %148 : vector<2x32xf32>
    %212 = arith.mulf %196, %204 : vector<2x32xf32>
    %213 = arith.addf %211, %212 : vector<2x32xf32>
    %214 = math.tanh %213 : vector<2x32xf32>
    %215 = arith.mulf %210, %214 : vector<2x32xf32>
    %c3_i32 = arith.constant 3 : i32
    %216 = arith.index_cast %c3_i32 : i32 to index
    %c0_59 = arith.constant 0 : index
    %c0_60 = arith.constant 0 : index
    %217 = vector.load %arg1[%216, %c0_59, %c0_60] : memref<8x2x16xf32, #tpu.memory_space<vmem>>, vector<1x2x16xf32>
    %218 = vector.shape_cast %217 : vector<1x2x16xf32> to vector<2x16xf32>
    %219 = arith.truncf %218 : vector<2x16xf32> to vector<2x16xbf16>
    %cst_61 = arith.constant dense<0.000000e+00> : vector<2x128xf32>
    %220 = tpu.matmul %219, %3, %cst_61 {dimension_numbers = #tpu.dot_dimension_numbers<[1], [0], [0], [1], [0, 0, 1, 1], [], []>} : vector<2x16xbf16>, vector<16x128xbf16>, vector<2x128xf32> -> vector<2x128xf32>
    %221 = arith.truncf %184 : vector<2x32xf32> to vector<2x32xbf16>
    %cst_62 = arith.constant dense<0.000000e+00> : vector<2x128xf32>
    %222 = tpu.matmul %221, %5, %cst_62 {dimension_numbers = #tpu.dot_dimension_numbers<[1], [0], [0], [1], [0, 0, 1, 1], [], []>} : vector<2x32xbf16>, vector<32x128xbf16>, vector<2x128xf32> -> vector<2x128xf32>
    %223 = arith.addf %220, %222 : vector<2x128xf32>
    %224 = arith.addf %223, %9 : vector<2x128xf32>
    %225 = vector.extract_strided_slice %224 {offsets = [0, 0], sizes = [2, 32], strides = [1, 1]} : vector<2x128xf32> to vector<2x32xf32>
    %226 = arith.negf %225 : vector<2x32xf32>
    %227 = math.exp %226 : vector<2x32xf32>
    %cst_63 = arith.constant 1.000000e+00 : f32
    %228 = vector.broadcast %cst_63 : f32 to vector<2x32xf32>
    %229 = arith.addf %228, %227 : vector<2x32xf32>
    %230 = arith.divf %228, %229 : vector<2x32xf32>
    %231 = vector.extract_strided_slice %224 {offsets = [0, 32], sizes = [2, 32], strides = [1, 1]} : vector<2x128xf32> to vector<2x32xf32>
    %232 = arith.negf %231 : vector<2x32xf32>
    %233 = math.exp %232 : vector<2x32xf32>
    %cst_64 = arith.constant 1.000000e+00 : f32
    %234 = vector.broadcast %cst_64 : f32 to vector<2x32xf32>
    %235 = arith.addf %234, %233 : vector<2x32xf32>
    %236 = arith.divf %234, %235 : vector<2x32xf32>
    %237 = vector.extract_strided_slice %224 {offsets = [0, 64], sizes = [2, 32], strides = [1, 1]} : vector<2x128xf32> to vector<2x32xf32>
    %238 = math.tanh %237 : vector<2x32xf32>
    %239 = vector.extract_strided_slice %224 {offsets = [0, 96], sizes = [2, 32], strides = [1, 1]} : vector<2x128xf32> to vector<2x32xf32>
    %240 = arith.negf %239 : vector<2x32xf32>
    %241 = math.exp %240 : vector<2x32xf32>
    %cst_65 = arith.constant 1.000000e+00 : f32
    %242 = vector.broadcast %cst_65 : f32 to vector<2x32xf32>
    %243 = arith.addf %242, %241 : vector<2x32xf32>
    %244 = arith.divf %242, %243 : vector<2x32xf32>
    %245 = arith.mulf %236, %182 : vector<2x32xf32>
    %246 = arith.mulf %230, %238 : vector<2x32xf32>
    %247 = arith.addf %245, %246 : vector<2x32xf32>
    %248 = math.tanh %247 : vector<2x32xf32>
    %249 = arith.mulf %244, %248 : vector<2x32xf32>
    %250 = arith.truncf %249 : vector<2x32xf32> to vector<2x32xbf16>
    %cst_66 = arith.constant dense<0.000000e+00> : vector<2x128xf32>
    %251 = tpu.matmul %250, %4, %cst_66 {dimension_numbers = #tpu.dot_dimension_numbers<[1], [0], [0], [1], [0, 0, 1, 1], [], []>} : vector<2x32xbf16>, vector<32x128xbf16>, vector<2x128xf32> -> vector<2x128xf32>
    %252 = arith.truncf %215 : vector<2x32xf32> to vector<2x32xbf16>
    %cst_67 = arith.constant dense<0.000000e+00> : vector<2x128xf32>
    %253 = tpu.matmul %252, %6, %cst_67 {dimension_numbers = #tpu.dot_dimension_numbers<[1], [0], [0], [1], [0, 0, 1, 1], [], []>} : vector<2x32xbf16>, vector<32x128xbf16>, vector<2x128xf32> -> vector<2x128xf32>
    %254 = arith.addf %251, %253 : vector<2x128xf32>
    %255 = arith.addf %254, %12 : vector<2x128xf32>
    %256 = vector.extract_strided_slice %255 {offsets = [0, 0], sizes = [2, 32], strides = [1, 1]} : vector<2x128xf32> to vector<2x32xf32>
    %257 = arith.negf %256 : vector<2x32xf32>
    %258 = math.exp %257 : vector<2x32xf32>
    %cst_68 = arith.constant 1.000000e+00 : f32
    %259 = vector.broadcast %cst_68 : f32 to vector<2x32xf32>
    %260 = arith.addf %259, %258 : vector<2x32xf32>
    %261 = arith.divf %259, %260 : vector<2x32xf32>
    %262 = vector.extract_strided_slice %255 {offsets = [0, 32], sizes = [2, 32], strides = [1, 1]} : vector<2x128xf32> to vector<2x32xf32>
    %263 = arith.negf %262 : vector<2x32xf32>
    %264 = math.exp %263 : vector<2x32xf32>
    %cst_69 = arith.constant 1.000000e+00 : f32
    %265 = vector.broadcast %cst_69 : f32 to vector<2x32xf32>
    %266 = arith.addf %265, %264 : vector<2x32xf32>
    %267 = arith.divf %265, %266 : vector<2x32xf32>
    %268 = vector.extract_strided_slice %255 {offsets = [0, 64], sizes = [2, 32], strides = [1, 1]} : vector<2x128xf32> to vector<2x32xf32>
    %269 = math.tanh %268 : vector<2x32xf32>
    %270 = vector.extract_strided_slice %255 {offsets = [0, 96], sizes = [2, 32], strides = [1, 1]} : vector<2x128xf32> to vector<2x32xf32>
    %271 = arith.negf %270 : vector<2x32xf32>
    %272 = math.exp %271 : vector<2x32xf32>
    %cst_70 = arith.constant 1.000000e+00 : f32
    %273 = vector.broadcast %cst_70 : f32 to vector<2x32xf32>
    %274 = arith.addf %273, %272 : vector<2x32xf32>
    %275 = arith.divf %273, %274 : vector<2x32xf32>
    %276 = arith.mulf %267, %213 : vector<2x32xf32>
    %277 = arith.mulf %261, %269 : vector<2x32xf32>
    %278 = arith.addf %276, %277 : vector<2x32xf32>
    %279 = math.tanh %278 : vector<2x32xf32>
    %280 = arith.mulf %275, %279 : vector<2x32xf32>
    %c4_i32 = arith.constant 4 : i32
    %281 = arith.index_cast %c4_i32 : i32 to index
    %c0_71 = arith.constant 0 : index
    %c0_72 = arith.constant 0 : index
    %282 = vector.load %arg1[%281, %c0_71, %c0_72] : memref<8x2x16xf32, #tpu.memory_space<vmem>>, vector<1x2x16xf32>
    %283 = vector.shape_cast %282 : vector<1x2x16xf32> to vector<2x16xf32>
    %284 = arith.truncf %283 : vector<2x16xf32> to vector<2x16xbf16>
    %cst_73 = arith.constant dense<0.000000e+00> : vector<2x128xf32>
    %285 = tpu.matmul %284, %3, %cst_73 {dimension_numbers = #tpu.dot_dimension_numbers<[1], [0], [0], [1], [0, 0, 1, 1], [], []>} : vector<2x16xbf16>, vector<16x128xbf16>, vector<2x128xf32> -> vector<2x128xf32>
    %286 = arith.truncf %249 : vector<2x32xf32> to vector<2x32xbf16>
    %cst_74 = arith.constant dense<0.000000e+00> : vector<2x128xf32>
    %287 = tpu.matmul %286, %5, %cst_74 {dimension_numbers = #tpu.dot_dimension_numbers<[1], [0], [0], [1], [0, 0, 1, 1], [], []>} : vector<2x32xbf16>, vector<32x128xbf16>, vector<2x128xf32> -> vector<2x128xf32>
    %288 = arith.addf %285, %287 : vector<2x128xf32>
    %289 = arith.addf %288, %9 : vector<2x128xf32>
    %290 = vector.extract_strided_slice %289 {offsets = [0, 0], sizes = [2, 32], strides = [1, 1]} : vector<2x128xf32> to vector<2x32xf32>
    %291 = arith.negf %290 : vector<2x32xf32>
    %292 = math.exp %291 : vector<2x32xf32>
    %cst_75 = arith.constant 1.000000e+00 : f32
    %293 = vector.broadcast %cst_75 : f32 to vector<2x32xf32>
    %294 = arith.addf %293, %292 : vector<2x32xf32>
    %295 = arith.divf %293, %294 : vector<2x32xf32>
    %296 = vector.extract_strided_slice %289 {offsets = [0, 32], sizes = [2, 32], strides = [1, 1]} : vector<2x128xf32> to vector<2x32xf32>
    %297 = arith.negf %296 : vector<2x32xf32>
    %298 = math.exp %297 : vector<2x32xf32>
    %cst_76 = arith.constant 1.000000e+00 : f32
    %299 = vector.broadcast %cst_76 : f32 to vector<2x32xf32>
    %300 = arith.addf %299, %298 : vector<2x32xf32>
    %301 = arith.divf %299, %300 : vector<2x32xf32>
    %302 = vector.extract_strided_slice %289 {offsets = [0, 64], sizes = [2, 32], strides = [1, 1]} : vector<2x128xf32> to vector<2x32xf32>
    %303 = math.tanh %302 : vector<2x32xf32>
    %304 = vector.extract_strided_slice %289 {offsets = [0, 96], sizes = [2, 32], strides = [1, 1]} : vector<2x128xf32> to vector<2x32xf32>
    %305 = arith.negf %304 : vector<2x32xf32>
    %306 = math.exp %305 : vector<2x32xf32>
    %cst_77 = arith.constant 1.000000e+00 : f32
    %307 = vector.broadcast %cst_77 : f32 to vector<2x32xf32>
    %308 = arith.addf %307, %306 : vector<2x32xf32>
    %309 = arith.divf %307, %308 : vector<2x32xf32>
    %310 = arith.mulf %301, %247 : vector<2x32xf32>
    %311 = arith.mulf %295, %303 : vector<2x32xf32>
    %312 = arith.addf %310, %311 : vector<2x32xf32>
    %313 = math.tanh %312 : vector<2x32xf32>
    %314 = arith.mulf %309, %313 : vector<2x32xf32>
    %315 = arith.truncf %314 : vector<2x32xf32> to vector<2x32xbf16>
    %cst_78 = arith.constant dense<0.000000e+00> : vector<2x128xf32>
    %316 = tpu.matmul %315, %4, %cst_78 {dimension_numbers = #tpu.dot_dimension_numbers<[1], [0], [0], [1], [0, 0, 1, 1], [], []>} : vector<2x32xbf16>, vector<32x128xbf16>, vector<2x128xf32> -> vector<2x128xf32>
    %317 = arith.truncf %280 : vector<2x32xf32> to vector<2x32xbf16>
    %cst_79 = arith.constant dense<0.000000e+00> : vector<2x128xf32>
    %318 = tpu.matmul %317, %6, %cst_79 {dimension_numbers = #tpu.dot_dimension_numbers<[1], [0], [0], [1], [0, 0, 1, 1], [], []>} : vector<2x32xbf16>, vector<32x128xbf16>, vector<2x128xf32> -> vector<2x128xf32>
    %319 = arith.addf %316, %318 : vector<2x128xf32>
    %320 = arith.addf %319, %12 : vector<2x128xf32>
    %321 = vector.extract_strided_slice %320 {offsets = [0, 0], sizes = [2, 32], strides = [1, 1]} : vector<2x128xf32> to vector<2x32xf32>
    %322 = arith.negf %321 : vector<2x32xf32>
    %323 = math.exp %322 : vector<2x32xf32>
    %cst_80 = arith.constant 1.000000e+00 : f32
    %324 = vector.broadcast %cst_80 : f32 to vector<2x32xf32>
    %325 = arith.addf %324, %323 : vector<2x32xf32>
    %326 = arith.divf %324, %325 : vector<2x32xf32>
    %327 = vector.extract_strided_slice %320 {offsets = [0, 32], sizes = [2, 32], strides = [1, 1]} : vector<2x128xf32> to vector<2x32xf32>
    %328 = arith.negf %327 : vector<2x32xf32>
    %329 = math.exp %328 : vector<2x32xf32>
    %cst_81 = arith.constant 1.000000e+00 : f32
    %330 = vector.broadcast %cst_81 : f32 to vector<2x32xf32>
    %331 = arith.addf %330, %329 : vector<2x32xf32>
    %332 = arith.divf %330, %331 : vector<2x32xf32>
    %333 = vector.extract_strided_slice %320 {offsets = [0, 64], sizes = [2, 32], strides = [1, 1]} : vector<2x128xf32> to vector<2x32xf32>
    %334 = math.tanh %333 : vector<2x32xf32>
    %335 = vector.extract_strided_slice %320 {offsets = [0, 96], sizes = [2, 32], strides = [1, 1]} : vector<2x128xf32> to vector<2x32xf32>
    %336 = arith.negf %335 : vector<2x32xf32>
    %337 = math.exp %336 : vector<2x32xf32>
    %cst_82 = arith.constant 1.000000e+00 : f32
    %338 = vector.broadcast %cst_82 : f32 to vector<2x32xf32>
    %339 = arith.addf %338, %337 : vector<2x32xf32>
    %340 = arith.divf %338, %339 : vector<2x32xf32>
    %341 = arith.mulf %332, %278 : vector<2x32xf32>
    %342 = arith.mulf %326, %334 : vector<2x32xf32>
    %343 = arith.addf %341, %342 : vector<2x32xf32>
    %344 = math.tanh %343 : vector<2x32xf32>
    %345 = arith.mulf %340, %344 : vector<2x32xf32>
    %c5_i32 = arith.constant 5 : i32
    %346 = arith.index_cast %c5_i32 : i32 to index
    %c0_83 = arith.constant 0 : index
    %c0_84 = arith.constant 0 : index
    %347 = vector.load %arg1[%346, %c0_83, %c0_84] : memref<8x2x16xf32, #tpu.memory_space<vmem>>, vector<1x2x16xf32>
    %348 = vector.shape_cast %347 : vector<1x2x16xf32> to vector<2x16xf32>
    %349 = arith.truncf %348 : vector<2x16xf32> to vector<2x16xbf16>
    %cst_85 = arith.constant dense<0.000000e+00> : vector<2x128xf32>
    %350 = tpu.matmul %349, %3, %cst_85 {dimension_numbers = #tpu.dot_dimension_numbers<[1], [0], [0], [1], [0, 0, 1, 1], [], []>} : vector<2x16xbf16>, vector<16x128xbf16>, vector<2x128xf32> -> vector<2x128xf32>
    %351 = arith.truncf %314 : vector<2x32xf32> to vector<2x32xbf16>
    %cst_86 = arith.constant dense<0.000000e+00> : vector<2x128xf32>
    %352 = tpu.matmul %351, %5, %cst_86 {dimension_numbers = #tpu.dot_dimension_numbers<[1], [0], [0], [1], [0, 0, 1, 1], [], []>} : vector<2x32xbf16>, vector<32x128xbf16>, vector<2x128xf32> -> vector<2x128xf32>
    %353 = arith.addf %350, %352 : vector<2x128xf32>
    %354 = arith.addf %353, %9 : vector<2x128xf32>
    %355 = vector.extract_strided_slice %354 {offsets = [0, 0], sizes = [2, 32], strides = [1, 1]} : vector<2x128xf32> to vector<2x32xf32>
    %356 = arith.negf %355 : vector<2x32xf32>
    %357 = math.exp %356 : vector<2x32xf32>
    %cst_87 = arith.constant 1.000000e+00 : f32
    %358 = vector.broadcast %cst_87 : f32 to vector<2x32xf32>
    %359 = arith.addf %358, %357 : vector<2x32xf32>
    %360 = arith.divf %358, %359 : vector<2x32xf32>
    %361 = vector.extract_strided_slice %354 {offsets = [0, 32], sizes = [2, 32], strides = [1, 1]} : vector<2x128xf32> to vector<2x32xf32>
    %362 = arith.negf %361 : vector<2x32xf32>
    %363 = math.exp %362 : vector<2x32xf32>
    %cst_88 = arith.constant 1.000000e+00 : f32
    %364 = vector.broadcast %cst_88 : f32 to vector<2x32xf32>
    %365 = arith.addf %364, %363 : vector<2x32xf32>
    %366 = arith.divf %364, %365 : vector<2x32xf32>
    %367 = vector.extract_strided_slice %354 {offsets = [0, 64], sizes = [2, 32], strides = [1, 1]} : vector<2x128xf32> to vector<2x32xf32>
    %368 = math.tanh %367 : vector<2x32xf32>
    %369 = vector.extract_strided_slice %354 {offsets = [0, 96], sizes = [2, 32], strides = [1, 1]} : vector<2x128xf32> to vector<2x32xf32>
    %370 = arith.negf %369 : vector<2x32xf32>
    %371 = math.exp %370 : vector<2x32xf32>
    %cst_89 = arith.constant 1.000000e+00 : f32
    %372 = vector.broadcast %cst_89 : f32 to vector<2x32xf32>
    %373 = arith.addf %372, %371 : vector<2x32xf32>
    %374 = arith.divf %372, %373 : vector<2x32xf32>
    %375 = arith.mulf %366, %312 : vector<2x32xf32>
    %376 = arith.mulf %360, %368 : vector<2x32xf32>
    %377 = arith.addf %375, %376 : vector<2x32xf32>
    %378 = math.tanh %377 : vector<2x32xf32>
    %379 = arith.mulf %374, %378 : vector<2x32xf32>
    %380 = arith.truncf %379 : vector<2x32xf32> to vector<2x32xbf16>
    %cst_90 = arith.constant dense<0.000000e+00> : vector<2x128xf32>
    %381 = tpu.matmul %380, %4, %cst_90 {dimension_numbers = #tpu.dot_dimension_numbers<[1], [0], [0], [1], [0, 0, 1, 1], [], []>} : vector<2x32xbf16>, vector<32x128xbf16>, vector<2x128xf32> -> vector<2x128xf32>
    %382 = arith.truncf %345 : vector<2x32xf32> to vector<2x32xbf16>
    %cst_91 = arith.constant dense<0.000000e+00> : vector<2x128xf32>
    %383 = tpu.matmul %382, %6, %cst_91 {dimension_numbers = #tpu.dot_dimension_numbers<[1], [0], [0], [1], [0, 0, 1, 1], [], []>} : vector<2x32xbf16>, vector<32x128xbf16>, vector<2x128xf32> -> vector<2x128xf32>
    %384 = arith.addf %381, %383 : vector<2x128xf32>
    %385 = arith.addf %384, %12 : vector<2x128xf32>
    %386 = vector.extract_strided_slice %385 {offsets = [0, 0], sizes = [2, 32], strides = [1, 1]} : vector<2x128xf32> to vector<2x32xf32>
    %387 = arith.negf %386 : vector<2x32xf32>
    %388 = math.exp %387 : vector<2x32xf32>
    %cst_92 = arith.constant 1.000000e+00 : f32
    %389 = vector.broadcast %cst_92 : f32 to vector<2x32xf32>
    %390 = arith.addf %389, %388 : vector<2x32xf32>
    %391 = arith.divf %389, %390 : vector<2x32xf32>
    %392 = vector.extract_strided_slice %385 {offsets = [0, 32], sizes = [2, 32], strides = [1, 1]} : vector<2x128xf32> to vector<2x32xf32>
    %393 = arith.negf %392 : vector<2x32xf32>
    %394 = math.exp %393 : vector<2x32xf32>
    %cst_93 = arith.constant 1.000000e+00 : f32
    %395 = vector.broadcast %cst_93 : f32 to vector<2x32xf32>
    %396 = arith.addf %395, %394 : vector<2x32xf32>
    %397 = arith.divf %395, %396 : vector<2x32xf32>
    %398 = vector.extract_strided_slice %385 {offsets = [0, 64], sizes = [2, 32], strides = [1, 1]} : vector<2x128xf32> to vector<2x32xf32>
    %399 = math.tanh %398 : vector<2x32xf32>
    %400 = vector.extract_strided_slice %385 {offsets = [0, 96], sizes = [2, 32], strides = [1, 1]} : vector<2x128xf32> to vector<2x32xf32>
    %401 = arith.negf %400 : vector<2x32xf32>
    %402 = math.exp %401 : vector<2x32xf32>
    %cst_94 = arith.constant 1.000000e+00 : f32
    %403 = vector.broadcast %cst_94 : f32 to vector<2x32xf32>
    %404 = arith.addf %403, %402 : vector<2x32xf32>
    %405 = arith.divf %403, %404 : vector<2x32xf32>
    %406 = arith.mulf %397, %343 : vector<2x32xf32>
    %407 = arith.mulf %391, %399 : vector<2x32xf32>
    %408 = arith.addf %406, %407 : vector<2x32xf32>
    %409 = math.tanh %408 : vector<2x32xf32>
    %410 = arith.mulf %405, %409 : vector<2x32xf32>
    %c6_i32 = arith.constant 6 : i32
    %411 = arith.index_cast %c6_i32 : i32 to index
    %c0_95 = arith.constant 0 : index
    %c0_96 = arith.constant 0 : index
    %412 = vector.load %arg1[%411, %c0_95, %c0_96] : memref<8x2x16xf32, #tpu.memory_space<vmem>>, vector<1x2x16xf32>
    %413 = vector.shape_cast %412 : vector<1x2x16xf32> to vector<2x16xf32>
    %414 = arith.truncf %413 : vector<2x16xf32> to vector<2x16xbf16>
    %cst_97 = arith.constant dense<0.000000e+00> : vector<2x128xf32>
    %415 = tpu.matmul %414, %3, %cst_97 {dimension_numbers = #tpu.dot_dimension_numbers<[1], [0], [0], [1], [0, 0, 1, 1], [], []>} : vector<2x16xbf16>, vector<16x128xbf16>, vector<2x128xf32> -> vector<2x128xf32>
    %416 = arith.truncf %379 : vector<2x32xf32> to vector<2x32xbf16>
    %cst_98 = arith.constant dense<0.000000e+00> : vector<2x128xf32>
    %417 = tpu.matmul %416, %5, %cst_98 {dimension_numbers = #tpu.dot_dimension_numbers<[1], [0], [0], [1], [0, 0, 1, 1], [], []>} : vector<2x32xbf16>, vector<32x128xbf16>, vector<2x128xf32> -> vector<2x128xf32>
    %418 = arith.addf %415, %417 : vector<2x128xf32>
    %419 = arith.addf %418, %9 : vector<2x128xf32>
    %420 = vector.extract_strided_slice %419 {offsets = [0, 0], sizes = [2, 32], strides = [1, 1]} : vector<2x128xf32> to vector<2x32xf32>
    %421 = arith.negf %420 : vector<2x32xf32>
    %422 = math.exp %421 : vector<2x32xf32>
    %cst_99 = arith.constant 1.000000e+00 : f32
    %423 = vector.broadcast %cst_99 : f32 to vector<2x32xf32>
    %424 = arith.addf %423, %422 : vector<2x32xf32>
    %425 = arith.divf %423, %424 : vector<2x32xf32>
    %426 = vector.extract_strided_slice %419 {offsets = [0, 32], sizes = [2, 32], strides = [1, 1]} : vector<2x128xf32> to vector<2x32xf32>
    %427 = arith.negf %426 : vector<2x32xf32>
    %428 = math.exp %427 : vector<2x32xf32>
    %cst_100 = arith.constant 1.000000e+00 : f32
    %429 = vector.broadcast %cst_100 : f32 to vector<2x32xf32>
    %430 = arith.addf %429, %428 : vector<2x32xf32>
    %431 = arith.divf %429, %430 : vector<2x32xf32>
    %432 = vector.extract_strided_slice %419 {offsets = [0, 64], sizes = [2, 32], strides = [1, 1]} : vector<2x128xf32> to vector<2x32xf32>
    %433 = math.tanh %432 : vector<2x32xf32>
    %434 = vector.extract_strided_slice %419 {offsets = [0, 96], sizes = [2, 32], strides = [1, 1]} : vector<2x128xf32> to vector<2x32xf32>
    %435 = arith.negf %434 : vector<2x32xf32>
    %436 = math.exp %435 : vector<2x32xf32>
    %cst_101 = arith.constant 1.000000e+00 : f32
    %437 = vector.broadcast %cst_101 : f32 to vector<2x32xf32>
    %438 = arith.addf %437, %436 : vector<2x32xf32>
    %439 = arith.divf %437, %438 : vector<2x32xf32>
    %440 = arith.mulf %431, %377 : vector<2x32xf32>
    %441 = arith.mulf %425, %433 : vector<2x32xf32>
    %442 = arith.addf %440, %441 : vector<2x32xf32>
    %443 = math.tanh %442 : vector<2x32xf32>
    %444 = arith.mulf %439, %443 : vector<2x32xf32>
    %445 = arith.truncf %444 : vector<2x32xf32> to vector<2x32xbf16>
    %cst_102 = arith.constant dense<0.000000e+00> : vector<2x128xf32>
    %446 = tpu.matmul %445, %4, %cst_102 {dimension_numbers = #tpu.dot_dimension_numbers<[1], [0], [0], [1], [0, 0, 1, 1], [], []>} : vector<2x32xbf16>, vector<32x128xbf16>, vector<2x128xf32> -> vector<2x128xf32>
    %447 = arith.truncf %410 : vector<2x32xf32> to vector<2x32xbf16>
    %cst_103 = arith.constant dense<0.000000e+00> : vector<2x128xf32>
    %448 = tpu.matmul %447, %6, %cst_103 {dimension_numbers = #tpu.dot_dimension_numbers<[1], [0], [0], [1], [0, 0, 1, 1], [], []>} : vector<2x32xbf16>, vector<32x128xbf16>, vector<2x128xf32> -> vector<2x128xf32>
    %449 = arith.addf %446, %448 : vector<2x128xf32>
    %450 = arith.addf %449, %12 : vector<2x128xf32>
    %451 = vector.extract_strided_slice %450 {offsets = [0, 0], sizes = [2, 32], strides = [1, 1]} : vector<2x128xf32> to vector<2x32xf32>
    %452 = arith.negf %451 : vector<2x32xf32>
    %453 = math.exp %452 : vector<2x32xf32>
    %cst_104 = arith.constant 1.000000e+00 : f32
    %454 = vector.broadcast %cst_104 : f32 to vector<2x32xf32>
    %455 = arith.addf %454, %453 : vector<2x32xf32>
    %456 = arith.divf %454, %455 : vector<2x32xf32>
    %457 = vector.extract_strided_slice %450 {offsets = [0, 32], sizes = [2, 32], strides = [1, 1]} : vector<2x128xf32> to vector<2x32xf32>
    %458 = arith.negf %457 : vector<2x32xf32>
    %459 = math.exp %458 : vector<2x32xf32>
    %cst_105 = arith.constant 1.000000e+00 : f32
    %460 = vector.broadcast %cst_105 : f32 to vector<2x32xf32>
    %461 = arith.addf %460, %459 : vector<2x32xf32>
    %462 = arith.divf %460, %461 : vector<2x32xf32>
    %463 = vector.extract_strided_slice %450 {offsets = [0, 64], sizes = [2, 32], strides = [1, 1]} : vector<2x128xf32> to vector<2x32xf32>
    %464 = math.tanh %463 : vector<2x32xf32>
    %465 = vector.extract_strided_slice %450 {offsets = [0, 96], sizes = [2, 32], strides = [1, 1]} : vector<2x128xf32> to vector<2x32xf32>
    %466 = arith.negf %465 : vector<2x32xf32>
    %467 = math.exp %466 : vector<2x32xf32>
    %cst_106 = arith.constant 1.000000e+00 : f32
    %468 = vector.broadcast %cst_106 : f32 to vector<2x32xf32>
    %469 = arith.addf %468, %467 : vector<2x32xf32>
    %470 = arith.divf %468, %469 : vector<2x32xf32>
    %471 = arith.mulf %462, %408 : vector<2x32xf32>
    %472 = arith.mulf %456, %464 : vector<2x32xf32>
    %473 = arith.addf %471, %472 : vector<2x32xf32>
    %474 = math.tanh %473 : vector<2x32xf32>
    %475 = arith.mulf %470, %474 : vector<2x32xf32>
    %c7_i32 = arith.constant 7 : i32
    %476 = arith.index_cast %c7_i32 : i32 to index
    %c0_107 = arith.constant 0 : index
    %c0_108 = arith.constant 0 : index
    %477 = vector.load %arg1[%476, %c0_107, %c0_108] : memref<8x2x16xf32, #tpu.memory_space<vmem>>, vector<1x2x16xf32>
    %478 = vector.shape_cast %477 : vector<1x2x16xf32> to vector<2x16xf32>
    %479 = arith.truncf %478 : vector<2x16xf32> to vector<2x16xbf16>
    %cst_109 = arith.constant dense<0.000000e+00> : vector<2x128xf32>
    %480 = tpu.matmul %479, %3, %cst_109 {dimension_numbers = #tpu.dot_dimension_numbers<[1], [0], [0], [1], [0, 0, 1, 1], [], []>} : vector<2x16xbf16>, vector<16x128xbf16>, vector<2x128xf32> -> vector<2x128xf32>
    %481 = arith.truncf %444 : vector<2x32xf32> to vector<2x32xbf16>
    %cst_110 = arith.constant dense<0.000000e+00> : vector<2x128xf32>
    %482 = tpu.matmul %481, %5, %cst_110 {dimension_numbers = #tpu.dot_dimension_numbers<[1], [0], [0], [1], [0, 0, 1, 1], [], []>} : vector<2x32xbf16>, vector<32x128xbf16>, vector<2x128xf32> -> vector<2x128xf32>
    %483 = arith.addf %480, %482 : vector<2x128xf32>
    %484 = arith.addf %483, %9 : vector<2x128xf32>
    %485 = vector.extract_strided_slice %484 {offsets = [0, 0], sizes = [2, 32], strides = [1, 1]} : vector<2x128xf32> to vector<2x32xf32>
    %486 = arith.negf %485 : vector<2x32xf32>
    %487 = math.exp %486 : vector<2x32xf32>
    %cst_111 = arith.constant 1.000000e+00 : f32
    %488 = vector.broadcast %cst_111 : f32 to vector<2x32xf32>
    %489 = arith.addf %488, %487 : vector<2x32xf32>
    %490 = arith.divf %488, %489 : vector<2x32xf32>
    %491 = vector.extract_strided_slice %484 {offsets = [0, 32], sizes = [2, 32], strides = [1, 1]} : vector<2x128xf32> to vector<2x32xf32>
    %492 = arith.negf %491 : vector<2x32xf32>
    %493 = math.exp %492 : vector<2x32xf32>
    %cst_112 = arith.constant 1.000000e+00 : f32
    %494 = vector.broadcast %cst_112 : f32 to vector<2x32xf32>
    %495 = arith.addf %494, %493 : vector<2x32xf32>
    %496 = arith.divf %494, %495 : vector<2x32xf32>
    %497 = vector.extract_strided_slice %484 {offsets = [0, 64], sizes = [2, 32], strides = [1, 1]} : vector<2x128xf32> to vector<2x32xf32>
    %498 = math.tanh %497 : vector<2x32xf32>
    %499 = vector.extract_strided_slice %484 {offsets = [0, 96], sizes = [2, 32], strides = [1, 1]} : vector<2x128xf32> to vector<2x32xf32>
    %500 = arith.negf %499 : vector<2x32xf32>
    %501 = math.exp %500 : vector<2x32xf32>
    %cst_113 = arith.constant 1.000000e+00 : f32
    %502 = vector.broadcast %cst_113 : f32 to vector<2x32xf32>
    %503 = arith.addf %502, %501 : vector<2x32xf32>
    %504 = arith.divf %502, %503 : vector<2x32xf32>
    %505 = arith.mulf %496, %442 : vector<2x32xf32>
    %506 = arith.mulf %490, %498 : vector<2x32xf32>
    %507 = arith.addf %505, %506 : vector<2x32xf32>
    %508 = math.tanh %507 : vector<2x32xf32>
    %509 = arith.mulf %504, %508 : vector<2x32xf32>
    %510 = arith.truncf %509 : vector<2x32xf32> to vector<2x32xbf16>
    %cst_114 = arith.constant dense<0.000000e+00> : vector<2x128xf32>
    %511 = tpu.matmul %510, %4, %cst_114 {dimension_numbers = #tpu.dot_dimension_numbers<[1], [0], [0], [1], [0, 0, 1, 1], [], []>} : vector<2x32xbf16>, vector<32x128xbf16>, vector<2x128xf32> -> vector<2x128xf32>
    %512 = arith.truncf %475 : vector<2x32xf32> to vector<2x32xbf16>
    %cst_115 = arith.constant dense<0.000000e+00> : vector<2x128xf32>
    %513 = tpu.matmul %512, %6, %cst_115 {dimension_numbers = #tpu.dot_dimension_numbers<[1], [0], [0], [1], [0, 0, 1, 1], [], []>} : vector<2x32xbf16>, vector<32x128xbf16>, vector<2x128xf32> -> vector<2x128xf32>
    %514 = arith.addf %511, %513 : vector<2x128xf32>
    %515 = arith.addf %514, %12 : vector<2x128xf32>
    %516 = vector.extract_strided_slice %515 {offsets = [0, 0], sizes = [2, 32], strides = [1, 1]} : vector<2x128xf32> to vector<2x32xf32>
    %517 = arith.negf %516 : vector<2x32xf32>
    %518 = math.exp %517 : vector<2x32xf32>
    %cst_116 = arith.constant 1.000000e+00 : f32
    %519 = vector.broadcast %cst_116 : f32 to vector<2x32xf32>
    %520 = arith.addf %519, %518 : vector<2x32xf32>
    %521 = arith.divf %519, %520 : vector<2x32xf32>
    %522 = vector.extract_strided_slice %515 {offsets = [0, 32], sizes = [2, 32], strides = [1, 1]} : vector<2x128xf32> to vector<2x32xf32>
    %523 = arith.negf %522 : vector<2x32xf32>
    %524 = math.exp %523 : vector<2x32xf32>
    %cst_117 = arith.constant 1.000000e+00 : f32
    %525 = vector.broadcast %cst_117 : f32 to vector<2x32xf32>
    %526 = arith.addf %525, %524 : vector<2x32xf32>
    %527 = arith.divf %525, %526 : vector<2x32xf32>
    %528 = vector.extract_strided_slice %515 {offsets = [0, 64], sizes = [2, 32], strides = [1, 1]} : vector<2x128xf32> to vector<2x32xf32>
    %529 = math.tanh %528 : vector<2x32xf32>
    %530 = vector.extract_strided_slice %515 {offsets = [0, 96], sizes = [2, 32], strides = [1, 1]} : vector<2x128xf32> to vector<2x32xf32>
    %531 = arith.negf %530 : vector<2x32xf32>
    %532 = math.exp %531 : vector<2x32xf32>
    %cst_118 = arith.constant 1.000000e+00 : f32
    %533 = vector.broadcast %cst_118 : f32 to vector<2x32xf32>
    %534 = arith.addf %533, %532 : vector<2x32xf32>
    %535 = arith.divf %533, %534 : vector<2x32xf32>
    %536 = arith.mulf %527, %473 : vector<2x32xf32>
    %537 = arith.mulf %521, %529 : vector<2x32xf32>
    %538 = arith.addf %536, %537 : vector<2x32xf32>
    %539 = math.tanh %538 : vector<2x32xf32>
    %540 = arith.mulf %535, %539 : vector<2x32xf32>
    %c8_i32 = arith.constant 8 : i32
    %c0_119 = arith.constant 0 : index
    %c0_120 = arith.constant 0 : index
    %c0_121 = arith.constant 0 : index
    %541 = vector.load %arg15[%c0_119, %c0_120, %c0_121] : memref<2x2x32xf32, #tpu.memory_space<vmem>>, vector<1x2x32xf32>
    %542 = vector.shape_cast %541 : vector<1x2x32xf32> to vector<2x32xf32>
    %543 = vector.shape_cast %509 : vector<2x32xf32> to vector<1x2x32xf32>
    tpu.vector_store %arg15[%c0_119, %c0_120, %c0_121], %543 {strides = array<i32>} : memref<2x2x32xf32, #tpu.memory_space<vmem>>, vector<1x2x32xf32>,
    %c0_122 = arith.constant 0 : index
    %c0_123 = arith.constant 0 : index
    %c0_124 = arith.constant 0 : index
    %544 = vector.load %arg16[%c0_122, %c0_123, %c0_124] : memref<2x2x32xf32, #tpu.memory_space<vmem>>, vector<1x2x32xf32>
    %545 = vector.shape_cast %544 : vector<1x2x32xf32> to vector<2x32xf32>
    %546 = vector.shape_cast %507 : vector<2x32xf32> to vector<1x2x32xf32>
    tpu.vector_store %arg16[%c0_122, %c0_123, %c0_124], %546 {strides = array<i32>} : memref<2x2x32xf32, #tpu.memory_space<vmem>>, vector<1x2x32xf32>,
    %c0_125 = arith.constant 0 : index
    %c0_126 = arith.constant 0 : index
    %c0_127 = arith.constant 0 : index
    %547 = vector.load %arg13[%c0_125, %c0_126, %c0_127] : memref<2x2x32xf32, #tpu.memory_space<vmem>>, vector<1x2x32xf32>
    %548 = vector.shape_cast %547 : vector<1x2x32xf32> to vector<2x32xf32>
    %549 = vector.shape_cast %509 : vector<2x32xf32> to vector<1x2x32xf32>
    tpu.vector_store %arg13[%c0_125, %c0_126, %c0_127], %549 {strides = array<i32>} : memref<2x2x32xf32, #tpu.memory_space<vmem>>, vector<1x2x32xf32>,
    %c0_128 = arith.constant 0 : index
    %c0_129 = arith.constant 0 : index
    %c0_130 = arith.constant 0 : index
    %550 = vector.load %arg14[%c0_128, %c0_129, %c0_130] : memref<2x2x32xf32, #tpu.memory_space<vmem>>, vector<1x2x32xf32>
    %551 = vector.shape_cast %550 : vector<1x2x32xf32> to vector<2x32xf32>
    %552 = vector.shape_cast %507 : vector<2x32xf32> to vector<1x2x32xf32>
    tpu.vector_store %arg14[%c0_128, %c0_129, %c0_130], %552 {strides = array<i32>} : memref<2x2x32xf32, #tpu.memory_space<vmem>>, vector<1x2x32xf32>,
    %c1_131 = arith.constant 1 : index
    %c0_132 = arith.constant 0 : index
    %c0_133 = arith.constant 0 : index
    %553 = vector.load %arg15[%c1_131, %c0_132, %c0_133] : memref<2x2x32xf32, #tpu.memory_space<vmem>>, vector<1x2x32xf32>
    %554 = vector.shape_cast %553 : vector<1x2x32xf32> to vector<2x32xf32>
    %555 = vector.shape_cast %540 : vector<2x32xf32> to vector<1x2x32xf32>
    tpu.vector_store %arg15[%c1_131, %c0_132, %c0_133], %555 {strides = array<i32>} : memref<2x2x32xf32, #tpu.memory_space<vmem>>, vector<1x2x32xf32>,
    %c1_134 = arith.constant 1 : index
    %c0_135 = arith.constant 0 : index
    %c0_136 = arith.constant 0 : index
    %556 = vector.load %arg16[%c1_134, %c0_135, %c0_136] : memref<2x2x32xf32, #tpu.memory_space<vmem>>, vector<1x2x32xf32>
    %557 = vector.shape_cast %556 : vector<1x2x32xf32> to vector<2x32xf32>
    %558 = vector.shape_cast %538 : vector<2x32xf32> to vector<1x2x32xf32>
    tpu.vector_store %arg16[%c1_134, %c0_135, %c0_136], %558 {strides = array<i32>} : memref<2x2x32xf32, #tpu.memory_space<vmem>>, vector<1x2x32xf32>,
    %c1_137 = arith.constant 1 : index
    %c0_138 = arith.constant 0 : index
    %c0_139 = arith.constant 0 : index
    %559 = vector.load %arg13[%c1_137, %c0_138, %c0_139] : memref<2x2x32xf32, #tpu.memory_space<vmem>>, vector<1x2x32xf32>
    %560 = vector.shape_cast %559 : vector<1x2x32xf32> to vector<2x32xf32>
    %561 = vector.shape_cast %540 : vector<2x32xf32> to vector<1x2x32xf32>
    tpu.vector_store %arg13[%c1_137, %c0_138, %c0_139], %561 {strides = array<i32>} : memref<2x2x32xf32, #tpu.memory_space<vmem>>, vector<1x2x32xf32>,
    %c1_140 = arith.constant 1 : index
    %c0_141 = arith.constant 0 : index
    %c0_142 = arith.constant 0 : index
    %562 = vector.load %arg14[%c1_140, %c0_141, %c0_142] : memref<2x2x32xf32, #tpu.memory_space<vmem>>, vector<1x2x32xf32>
    %563 = vector.shape_cast %562 : vector<1x2x32xf32> to vector<2x32xf32>
    %564 = vector.shape_cast %538 : vector<2x32xf32> to vector<1x2x32xf32>
    tpu.vector_store %arg14[%c1_140, %c0_141, %c0_142], %564 {strides = array<i32>} : memref<2x2x32xf32, #tpu.memory_space<vmem>>, vector<1x2x32xf32>,
    %565 = arith.truncf %540 : vector<2x32xf32> to vector<2x32xbf16>
    %c0_143 = arith.constant 0 : index
    %c0_144 = arith.constant 0 : index
    %566 = vector.load %arg10[%c0_143, %c0_144] : memref<32x1xbf16, #tpu.memory_space<vmem>>, vector<32x1xbf16>
    %cst_145 = arith.constant dense<0.000000e+00> : vector<2x1xf32>
    %567 = tpu.matmul %565, %566, %cst_145 {dimension_numbers = #tpu.dot_dimension_numbers<[1], [0], [0], [1], [0, 0, 1, 1], [], []>} : vector<2x32xbf16>, vector<32x1xbf16>, vector<2x1xf32> -> vector<2x1xf32>
    %c0_146 = arith.constant 0 : index
    %c0_147 = arith.constant 0 : index
    %568 = vector.load %arg11[%c0_146, %c0_147] : memref<1x1xf32, #tpu.memory_space<vmem>>, vector<1x1xf32>
    %569 = vector.broadcast %568 : vector<1x1xf32> to vector<2x1xf32>
    %570 = arith.addf %567, %569 : vector<2x1xf32>
    %571 = arith.negf %570 : vector<2x1xf32>
    %572 = math.exp %571 : vector<2x1xf32>
    %cst_148 = arith.constant 1.000000e+00 : f32
    %573 = vector.broadcast %cst_148 : f32 to vector<2x1xf32>
    %574 = arith.addf %573, %572 : vector<2x1xf32>
    %575 = arith.divf %573, %574 : vector<2x1xf32>
    %c0_149 = arith.constant 0 : index
    %c0_150 = arith.constant 0 : index
    %576 = vector.load %arg12[%c0_149, %c0_150] : memref<2x1xf32, #tpu.memory_space<vmem>>, vector<2x1xf32>
    tpu.vector_store %arg12[%c0_149, %c0_150], %575 {strides = array<i32>} : memref<2x1xf32, #tpu.memory_space<vmem>>, vector<2x1xf32>,
    return
  }
  func.func @transform_0(%arg0: i32) -> (i32, i32, i32) {
    %c0_i32 = arith.constant 0 : i32
    %c0_i32_0 = arith.constant 0 : i32
    %c0_i32_1 = arith.constant 0 : i32
    return %arg0, %c0_i32, %c0_i32_0 : i32, i32, i32
  }
  func.func @transform_1(%arg0: i32) -> (i32, i32) {
    %c0_i32 = arith.constant 0 : i32
    %c0_i32_0 = arith.constant 0 : i32
    %c0_i32_1 = arith.constant 0 : i32
    return %c0_i32, %c0_i32_0 : i32, i32
  }
  func.func @transform_2(%arg0: i32) -> (i32, i32) {
    %c0_i32 = arith.constant 0 : i32
    %c0_i32_0 = arith.constant 0 : i32
    %c0_i32_1 = arith.constant 0 : i32
    return %c0_i32, %c0_i32_0 : i32, i32
  }
  func.func @transform_3(%arg0: i32) -> (i32, i32) {
    %c0_i32 = arith.constant 0 : i32
    %c0_i32_0 = arith.constant 0 : i32
    %c0_i32_1 = arith.constant 0 : i32
    return %c0_i32, %c0_i32_0 : i32, i32
  }
  func.func @transform_4(%arg0: i32) -> (i32, i32) {
    %c0_i32 = arith.constant 0 : i32
    %c0_i32_0 = arith.constant 0 : i32
    %c0_i32_1 = arith.constant 0 : i32
    return %c0_i32, %c0_i32_0 : i32, i32
  }
  func.func @transform_5(%arg0: i32) -> (i32, i32) {
    %c0_i32 = arith.constant 0 : i32
    %c0_i32_0 = arith.constant 0 : i32
    %c0_i32_1 = arith.constant 0 : i32
    return %c0_i32, %c0_i32_0 : i32, i32
  }
  func.func @transform_6(%arg0: i32) -> (i32, i32) {
    %c0_i32 = arith.constant 0 : i32
    %c0_i32_0 = arith.constant 0 : i32
    %c0_i32_1 = arith.constant 0 : i32
    return %c0_i32, %c0_i32_0 : i32, i32
  }
  func.func @transform_7(%arg0: i32) -> (i32, i32, i32) {
    %c0_i32 = arith.constant 0 : i32
    %c0_i32_0 = arith.constant 0 : i32
    %c0_i32_1 = arith.constant 0 : i32
    %c0_i32_2 = arith.constant 0 : i32
    return %c0_i32, %c0_i32_0, %c0_i32_1 : i32, i32, i32
  }
  func.func @transform_8(%arg0: i32) -> (i32, i32, i32) {
    %c0_i32 = arith.constant 0 : i32
    %c0_i32_0 = arith.constant 0 : i32
    %c0_i32_1 = arith.constant 0 : i32
    %c0_i32_2 = arith.constant 0 : i32
    return %c0_i32, %c0_i32_0, %c0_i32_1 : i32, i32, i32
  }
  func.func @transform_9(%arg0: i32) -> (i32, i32) {
    %c0_i32 = arith.constant 0 : i32
    %c0_i32_0 = arith.constant 0 : i32
    %c0_i32_1 = arith.constant 0 : i32
    return %c0_i32, %c0_i32_0 : i32, i32
  }
  func.func @transform_10(%arg0: i32) -> (i32, i32) {
    %c0_i32 = arith.constant 0 : i32
    %c0_i32_0 = arith.constant 0 : i32
    %c0_i32_1 = arith.constant 0 : i32
    return %c0_i32, %c0_i32_0 : i32, i32
  }
  func.func @transform_11(%arg0: i32) -> (i32, i32) {
    %c0_i32 = arith.constant 0 : i32
    %c0_i32_0 = arith.constant 0 : i32
    %c0_i32_1 = arith.constant 0 : i32
    return %c0_i32, %c0_i32_0 : i32, i32
  }
  func.func @transform_12(%arg0: i32) -> (i32, i32, i32) {
    %c0_i32 = arith.constant 0 : i32
    %c0_i32_0 = arith.constant 0 : i32
    %c0_i32_1 = arith.constant 0 : i32
    %c0_i32_2 = arith.constant 0 : i32
    return %c0_i32, %c0_i32_0, %c0_i32_1 : i32, i32, i32
  }
  func.func @transform_13(%arg0: i32) -> (i32, i32, i32) {
    %c0_i32 = arith.constant 0 : i32
    %c0_i32_0 = arith.constant 0 : i32
    %c0_i32_1 = arith.constant 0 : i32
    %c0_i32_2 = arith.constant 0 : i32
    return %c0_i32, %c0_i32_0, %c0_i32_1 : i32, i32, i32
  }
}

</mosaic_0001>

<bundles_post_ra>
// kernel: net_forward.1
= control target key start
LH: loop header
LB: loop body
LE: loop exit
PB: predicated region body
PF: predicated region fallthrough
CT: control target
= control target key end

     0   :  { %s3333_s0 = inlined_call_operand.vmem [shape: f32[8,2,16], index: 0, kind: input, shape index: {}]   ;;  %s3334_s1 = inlined_call_operand.vmem [shape: bf16[16,128], index: 1, kind: input, shape index: {}]   ;;  %s3335_s2 = inlined_call_operand.vmem [shape: bf16[32,128], index: 2, kind: input, shape index: {}]   ;;  %s3336_s3 = inlined_call_operand.vmem [shape: f32[1,128], index: 3, kind: input, shape index: {}]   ;;  %s3337_s4 = inlined_call_operand.vmem [shape: bf16[32,128], index: 4, kind: input, shape index: {}]   ;;  %s3338_s5 = inlined_call_operand.vmem [shape: bf16[32,128], index: 5, kind: input, shape index: {}]   ;;  %s3339_s6 = inlined_call_operand.vmem [shape: f32[1,128], index: 6, kind: input, shape index: {}]   ;;  %s3340_s7 = inlined_call_operand.vmem [shape: f32[2,2,32], index: 7, kind: input, shape index: {}]   ;;  %s3341_s8 = inlined_call_operand.vmem [shape: f32[2,2,32], index: 8, kind: input, shape index: {}]   ;;  %s3342_s9 = inlined_call_operand.vmem [shape: bf16[32,1], index: 9, kind: input, shape index: {}]   ;;  %s3343_s10 = inlined_call_operand.<no memory space> [shape: f32[1,1], index: 10, kind: input, shape index: {}]   ;;  %s3344_s11 = inlined_call_operand.vmem [shape: f32[2,1], index: 11, kind: output, shape index: {0}]   ;;  %s3345_s12 = inlined_call_operand.hbm [shape: f32[2,2,32], index: 12, kind: output, shape index: {1}]   ;;  %s3346_s13 = inlined_call_operand.hbm [shape: f32[2,2,32], index: 13, kind: output, shape index: {2}]  }
   0x1   :  { %v19_v0 = vstv %s3343_s10 }
   0x2   :  { %20 = vst [vmem:[#allocation4] sm:$0x1] %v19_v0 }
   0x3   :  { %21 = vsyncpa [#allocation6], 0  ;;  %v2824_v1 = vld [vmem:[%s3335_s2] sm:$0xff]   ;;  %v2740_v2 = vmov 0.0   ;;  %vm2741_vm0 = vmmov 0   ;;  %v2839_v4 = vld [vmem:[%s3335_s2 + $0x8] sm:$0xff]  }
   0x4   :  { %2286 = vmatprep.subr.bf16.mxu0 %v2740_v2  ;;  %2294 = vmatprep.subr.bf16.mxu1 %v2740_v2  ;;  %v2831_v3 = vld [vmem:[%s3334_s1] sm:$0xff]   ;;  %vm158_vm1 = vcmask 130048   ;;  %vm52_vm2 = vcmask 254976  }
   0x5   :  { %2287 = vmatpush3.bf16.msra.mxu0 %v2824_v1  ;;  %2296 = vmatprep.mubr.msk.bf16.mxu1 %vm2741_vm0, %v2740_v2  ;;  %v93_v5 = vld [vmem:[%s3333_s0] sm:$0x3] }
   0x6   :  { %2295 = vmatpush3.bf16.msra.mxu1 %v2831_v3  ;;  %2288 = vmatprep.subr.bf16.mxu0 %v2740_v2  ;;  %v50_v6 = vld [vmem:[%s3340_s7] sm:$0x3]  ;;  %v94_v7 = vpack.c.bf16 %v93_v5, %v93_v5 }
   0x7   :  { %2290 = vmatprep.mubr.msk.bf16.mxu0 %vm2741_vm0, %v2740_v2  ;;  %53 = vst.msk [vmem:[#allocation2] sm:$0x3] %vm52_vm2, %v50_v6  ;;  %2300 = vmatprep.subr.bf16.mxu1 %v2740_v2 }
   0x9   :  { %2289 = vmatpush3.bf16.msra.mxu0 %v2839_v4  ;;  %2297 = vmatmul.mubr.msk.bf16.vlgmr.msra.gmra.mrb[0].mxu1 %vm158_vm1, %v94_v7 }
   0xa   :  { %2304 = vmatprep.mubr.msk.bf16.mxu1 %vm2741_vm0, %v2740_v2  ;;  %2308 = vmatprep.subr.bf16.mxu0 %v2740_v2 }
   0xb   :  { %22 = vsyncpa [#allocation8], 0  ;;  %vm108_vm3 = vcmask 261120   ;;  %v55_v10 = vld [vmem:[%s3341_s8] sm:$0x3]  ;;  %s2742_s23 = smov 64  }
   0xc   :  { %57 = vst.msk [vmem:[#allocation3] sm:$0x3] %vm52_vm2, %v55_v10  ;;  %v2868_v15 = vld [vmem:[%s3336_s3] ss:$0 sm:$0xff]  ;;  %s2743_s24 = smov 32   ;;  %v2895_v37 = vld [vmem:[%s3338_s5 + $0x8] sm:$0xff]  }
   0xd   :  { %v2880_v34 = vld [vmem:[%s3338_s5] sm:$0xff]   ;;  %v2902_v38 = vld [vmem:[%s3337_s4 + $0x8] sm:$0xff]   ;;  %s2746_s15 = smov [#allocation7]  }
   0xe   :  { %v87_v8 = vld [vmem:[#allocation2] sm:$0x3]  ;;  %v51_v35 = vld [vmem:[%s3340_s7 + $0x2] sm:$0x3]  ;;  %2301 = vmatpush3.bf16.msra.mxu1 %v2880_v34  ;;  %s2109_s7 = sshll.u32 %s2746_s15, 4  ;;  %s2110_s7 = int_to_ptr.vmem [resolvable:$true] %s2109_s7 }
   0xf   :  { %v95_v9 = vpack.c.bf16 %v87_v8, %v87_v8  ;;  %54 = vst.msk [vmem:[#allocation2 + $0x2] sm:$0x3] %vm52_vm2, %v51_v35  ;;  %v2889_v36 = vld [vmem:[%s3337_s4] sm:$0xff]   ;;  %2302 = vmatprep.subr.bf16.mxu1 %v2740_v2 }
  0x10   :  { %v2141_v50 = vld [vmem:[%s3333_s0 + $0x2] sm:$0x3]  ;;  %v2947_v53 = vld [vmem:[%s3339_s6] ss:$0 sm:$0xff] }
  0x11   :  { %2291 = vmatmul.mubr.msk.bf16.vlgmr.msra.gmra.mrb[0].mxu0 %vm108_vm3, %v95_v9  ;;  %v377_v51 = vpack.c.bf16 %v2141_v50, %v2141_v50  ;;  %v56_v52 = vld [vmem:[%s3341_s8 + $0x2] sm:$0x3] }
  0x12   :  { %2312 = vmatprep.mubr.msk.bf16.mxu0 %vm2741_vm0, %v2740_v2  ;;  %2309 = vmatpush3.bf16.msra.mxu0 %v2889_v36  ;;  %58 = vst.msk [vmem:[#allocation3 + $0x2] sm:$0x3] %vm52_vm2, %v56_v52 }
  0x13   :  { %v90_v23 = vld [vmem:[#allocation3] sm:$0x3]  ;;  %2310 = vmatprep.subr.bf16.mxu0 %v2740_v2  ;;  %2303 = vmatpush3.bf16.msra.mxu1 %v2895_v37 }
  0x14   :  { %2316 = vmatprep.subr.bf16.mxu1 %v2740_v2 }
  0x16   :  { %2311 = vmatpush3.bf16.msra.mxu0 %v2902_v38  ;;  %v89_v40 = vld [vmem:[#allocation2 + $0x2] sm:$0x3] }
  0x17   :  { %2324 = vmatprep.subr.bf16.mxu0 %v2740_v2  ;;  %v232_v41 = vpack.c.bf16 %v89_v40, %v89_v40 }
  0x19   :  { %2305 = vmatmul.mubr.msk.bf16.vlgmr.msra.gmra.mrb[4].mxu1 %vm108_vm3, %v232_v41 }
  0x1a   :  { %2317 = vmatpush3.bf16.msra.mxu1 %v2824_v1  ;;  %2320 = vmatprep.mubr.msk.bf16.mxu1 %vm2741_vm0, %v2740_v2 }
  0x1b   :  { %2318 = vmatprep.subr.bf16.mxu1 %v2740_v2 }
  0x1e   :  { %2319 = vmatpush3.bf16.msra.mxu1 %v2839_v4 }
  0x1f   :  { %2330 = vmatprep.subr.bf16.mxu1 %v2740_v2 }
  0xdc   :  { %v196_v11 = vpop.f32.mrb[0].mxu1 }
  0xdd   :  { %v2298_v12 = vpop.f32.mrb[1].mxu1 }
  0xde   :  { %v199_v13 = vpop.f32.mrb[2].mxu1 }
  0xdf   :  { %v2299_v14 = vpop.f32.mrb[3].mxu1 }
  0xe4   :  { %v146_v16 = vpop.f32.mrb[0].mxu0 }
  0xe5   :  { %v197_v17 = vadd.f32 %v196_v11, %v146_v16  ;;  %v2292_v18 = vpop.f32.mrb[1].mxu0  ;;  %v92_v11 = vld [vmem:[#allocation3 + $0x2] sm:$0x3] }
  0xe6   :  { %v149_v19 = vpop.f32.mrb[2].mxu0 }
  0xe7   :  { %v202_v20 = vadd.f32 %v2868_v15, %v197_v17  ;;  %v2293_v21 = vpop.f32.mrb[3].mxu0 }
  0xe9   :  { %2551 = vtanh.f32 %v202_v20  ;;  %v2133_v24 = vmul.f32 -1.442695, %v202_v20 }
  0xeb   :  { %2553 = vpow2.f32 %v2133_v24 }
  0xec   :  { %v282_v45 = vpop.f32.mrb[4].mxu1 }
  0xed   :  { %v2306_v46 = vpop.f32.mrb[5].mxu1 }
  0xee   :  { %v285_v47 = vpop.f32.mrb[6].mxu1 }
  0xef   :  { %v2307_v48 = vpop.f32.mrb[7].mxu1  ;;  %v2148_v47 = vld [vmem:[%s3333_s0 + $0x4] sm:$0x3] }
  0xf0   :  { %v607_v48 = vpack.c.bf16 %v2148_v47, %v2148_v47 }
  0xf3   :  { %v2552_v22 = vpop.eup %2551 }
  0xf4   :  { %216 = vrot.lane.b32.xlu0 %v2552_v22, %s2742_s23 }
  0xf5   :  { %v2554_v25 = vpop.eup %2553 }
  0xf6   :  { %v206_v26 = vadd.f32 1.0, %v2554_v25 }
  0xf8   :  { %211 = vrot.lane.b32.xlu0 %v90_v23, %s2743_s24  ;;  %2555 = vrcp.f32 %v206_v26 }
 0x102   :  { %v2556_v27 = vpop.eup %2555 }
 0x166   :  { %v217_v28 = vpop.permute.xlu0 %216 }
 0x167   :  { %v219_v29 = vmul.f32 %v2556_v27, %v217_v28 }
 0x169   :  { %221 = vrot.lane.b32.xlu1 %v219_v29, %s2743_s24 }
 0x16a   :  { %v212_v30 = vpop.permute.xlu0 %211 }
 0x16b   :  { %v214_v31 = vmul.f32 %v2556_v27, %v212_v30 }
 0x1db   :  { %v222_v32 = vpop.permute.xlu1 %221 }
 0x1dc   :  { %v2874_v33 = vadd.f32 %v222_v32, %v214_v31 }
 0x1de   :  { %2557 = vtanh.f32 %v2874_v33 }
 0x1e8   :  { %v2558_v39 = vpop.eup %2557 }
 0x1e9   :  { %227 = vrot.lane.b32.xlu1 %v2558_v39, %s2742_s23 }
 0x25b   :  { %v228_v42 = vpop.permute.xlu1 %227 }
 0x25c   :  { %v230_v43 = vmul.f32 %v2556_v27, %v228_v42 }
 0x25e   :  { %v231_v44 = vpack.c.bf16 %v230_v43, %v230_v43 }
 0x260   :  { %289 = vrot.lane.b32.xlu0 %v231_v44, %s2743_s24 }
 0x2d2   :  { %v290_v49 = vpop.permute.xlu0 %289 }
 0x2d3   :  { %2313 = vmatmul.mubr.msk.bf16.vlgmr.msra.gmra.mrb[4].mxu0 %vm108_vm3, %v290_v49  ;;  %2321 = vmatmul.mubr.msk.bf16.vlgmr.msra.gmra.mrb[8].mxu1 %vm108_vm3, %v290_v49 }
 0x2d4   :  { %2325 = vmatpush3.bf16.msra.mxu0 %v2831_v3  ;;  %2326 = vmatprep.mubr.msk.bf16.mxu0 %vm2741_vm0, %v2740_v2 }
 0x2d5   :  { %2331 = vmatpush3.bf16.msra.mxu1 %v2880_v34  ;;  %2334 = vmatprep.mubr.msk.bf16.mxu1 %vm2741_vm0, %v2740_v2 }
 0x2d6   :  { %2332 = vmatprep.subr.bf16.mxu1 %v2740_v2  ;;  %2338 = vmatprep.subr.bf16.mxu0 %v2740_v2 }
 0x2d9   :  { %2333 = vmatpush3.bf16.msra.mxu1 %v2895_v37 }
 0x2da   :  { %2346 = vmatprep.subr.bf16.mxu1 %v2740_v2 }
 0x2db   :  { %2327 = vmatmul.mubr.msk.bf16.vlgmr.msra.gmra.mrb[8].mxu0 %vm158_vm1, %v377_v51 }
 0x2dc   :  { %2339 = vmatpush3.bf16.msra.mxu0 %v2889_v36  ;;  %2342 = vmatprep.mubr.msk.bf16.mxu0 %vm2741_vm0, %v2740_v2 }
 0x2dd   :  { %2340 = vmatprep.subr.bf16.mxu0 %v2740_v2 }
 0x2e0   :  { %2341 = vmatpush3.bf16.msra.mxu0 %v2902_v38 }
 0x2e1   :  { %2354 = vmatprep.subr.bf16.mxu0 %v2740_v2 }
 0x3a6   :  { %v340_v54 = vpop.f32.mrb[4].mxu0  ;;  %v412_v55 = vpop.f32.mrb[8].mxu1 }
 0x3a7   :  { %v341_v56 = vadd.f32 %v340_v54, %v282_v45  ;;  %v2314_v57 = vpop.f32.mrb[5].mxu0  ;;  %v2322_v58 = vpop.f32.mrb[9].mxu1 }
 0x3a8   :  { %v343_v59 = vpop.f32.mrb[6].mxu0  ;;  %v415_v60 = vpop.f32.mrb[10].mxu1 }
 0x3a9   :  { %v346_v61 = vadd.f32 %v2947_v53, %v341_v56  ;;  %v2315_v62 = vpop.f32.mrb[7].mxu0  ;;  %v2323_v63 = vpop.f32.mrb[11].mxu1 }
 0x3ab   :  { %2559 = vtanh.f32 %v346_v61  ;;  %v2140_v13 = vmul.f32 -1.442695, %v346_v61 }
 0x3ae   :  { %v455_v0 = vpop.f32.mrb[8].mxu0 }
 0x3af   :  { %v456_v5 = vadd.f32 %v455_v0, %v412_v55  ;;  %v2328_v6 = vpop.f32.mrb[9].mxu0 }
 0x3b0   :  { %v458_v7 = vpop.f32.mrb[10].mxu0 }
 0x3b1   :  { %v461_v8 = vadd.f32 %v2868_v15, %v456_v5  ;;  %v2329_v9 = vpop.f32.mrb[11].mxu0 }
 0x3b3   :  { %2561 = vtanh.f32 %v461_v8  ;;  %v2144_v14 = vmul.f32 -1.442695, %v461_v8 }
 0x3b4   :  { %2563 = vpow2.f32 %v2140_v13 }
 0x3b5   :  { %v2560_v10 = vpop.eup %2559  ;;  %2565 = vpow2.f32 %v2144_v14 }
 0x3b6   :  { %360 = vrot.lane.b32.xlu1 %v2560_v10, %s2742_s23 }
 0x3ba   :  { %355 = vrot.lane.b32.xlu1 %v92_v11, %s2743_s24 }
 0x3bd   :  { %v2562_v12 = vpop.eup %2561 }
 0x3be   :  { %471 = vrot.lane.b32.xlu0 %v2562_v12, %s2742_s23  ;;  %v2564_v16 = vpop.eup %2563 }
 0x3bf   :  { %v350_v17 = vadd.f32 1.0, %v2564_v16  ;;  %v2566_v18 = vpop.eup %2565 }
 0x3c0   :  { %v465_v19 = vadd.f32 1.0, %v2566_v18 }
 0x3c1   :  { %2567 = vrcp.f32 %v350_v17 }
 0x3c2   :  { %2569 = vrcp.f32 %v465_v19 }
 0x3cb   :  { %v2568_v20 = vpop.eup %2567 }
 0x3cc   :  { %v2570_v23 = vpop.eup %2569 }
 0x3cd   :  { %v469_v30 = vmul.f32 %v2570_v23, %v2874_v33 }
 0x428   :  { %v361_v21 = vpop.permute.xlu1 %360 }
 0x429   :  { %v363_v22 = vmul.f32 %v2568_v20, %v361_v21 }
 0x42b   :  { %365 = vrot.lane.b32.xlu0 %v363_v22, %s2743_s24 }
 0x42c   :  { %v356_v26 = vpop.permute.xlu1 %355 }
 0x42d   :  { %v358_v27 = vmul.f32 %v2568_v20, %v356_v26 }
 0x430   :  { %v472_v24 = vpop.permute.xlu0 %471 }
 0x431   :  { %v474_v25 = vmul.f32 %v2570_v23, %v472_v24 }
 0x433   :  { %476 = vrot.lane.b32.xlu1 %v474_v25, %s2743_s24 }
 0x49d   :  { %v366_v28 = vpop.permute.xlu0 %365 }
 0x49e   :  { %v2956_v29 = vadd.f32 %v366_v28, %v358_v27 }
 0x4a0   :  { %2571 = vtanh.f32 %v2956_v29 }
 0x4a5   :  { %v477_v31 = vpop.permute.xlu1 %476 }
 0x4a6   :  { %v2960_v32 = vadd.f32 %v477_v31, %v469_v30 }
 0x4a8   :  { %2573 = vtanh.f32 %v2960_v32 }
 0x4aa   :  { %v2572_v35 = vpop.eup %2571 }
 0x4ab   :  { %371 = vrot.lane.b32.xlu0 %v2572_v35, %s2742_s23 }
 0x4b2   :  { %v2574_v39 = vpop.eup %2573 }
 0x4b3   :  { %482 = vrot.lane.b32.xlu1 %v2574_v39, %s2742_s23 }
 0x51d   :  { %v372_v40 = vpop.permute.xlu0 %371 }
 0x51e   :  { %v374_v41 = vmul.f32 %v2568_v20, %v372_v40 }
 0x520   :  { %v487_v42 = vpack.c.bf16 %v374_v41, %v374_v41 }
 0x522   :  { %489 = vrot.lane.b32.xlu0 %v487_v42, %s2743_s24 }
 0x525   :  { %v483_v43 = vpop.permute.xlu1 %482 }
 0x526   :  { %v485_v44 = vmul.f32 %v2570_v23, %v483_v43 }
 0x528   :  { %v486_v45 = vpack.c.bf16 %v485_v44, %v485_v44 }
 0x52a   :  { %535 = vrot.lane.b32.xlu1 %v486_v45, %s2743_s24 }
 0x594   :  { %v490_v33 = vpop.permute.xlu0 %489 }
 0x595   :  { %2335 = vmatmul.mubr.msk.bf16.vlgmr.msra.gmra.mrb[12].mxu1 %vm108_vm3, %v490_v33  ;;  %v2155_v33 = vld [vmem:[%s3333_s0 + $0x6] sm:$0x3] }
 0x596   :  { %2347 = vmatpush3.bf16.msra.mxu1 %v2824_v1  ;;  %2350 = vmatprep.mubr.msk.bf16.mxu1 %vm2741_vm0, %v2740_v2 }
 0x597   :  { %2348 = vmatprep.subr.bf16.mxu1 %v2740_v2 }
 0x59a   :  { %2349 = vmatpush3.bf16.msra.mxu1 %v2839_v4 }
 0x59b   :  { %2360 = vmatprep.subr.bf16.mxu1 %v2740_v2 }
 0x59c   :  { %v536_v46 = vpop.permute.xlu1 %535 }
 0x59d   :  { %2343 = vmatmul.mubr.msk.bf16.vlgmr.msra.gmra.mrb[12].mxu0 %vm108_vm3, %v536_v46  ;;  %2351 = vmatmul.mubr.msk.bf16.vlgmr.msra.gmra.mrb[16].mxu1 %vm108_vm3, %v536_v46  ;;  %v837_v46 = vpack.c.bf16 %v2155_v33, %v2155_v33 }
 0x59e   :  { %2355 = vmatpush3.bf16.msra.mxu0 %v2831_v3  ;;  %2356 = vmatprep.mubr.msk.bf16.mxu0 %vm2741_vm0, %v2740_v2 }
 0x59f   :  { %2361 = vmatpush3.bf16.msra.mxu1 %v2880_v34  ;;  %2364 = vmatprep.mubr.msk.bf16.mxu1 %vm2741_vm0, %v2740_v2 }
 0x5a0   :  { %2362 = vmatprep.subr.bf16.mxu1 %v2740_v2  ;;  %2368 = vmatprep.subr.bf16.mxu0 %v2740_v2 }
 0x5a3   :  { %2363 = vmatpush3.bf16.msra.mxu1 %v2895_v37 }
 0x5a4   :  { %2376 = vmatprep.subr.bf16.mxu1 %v2740_v2 }
 0x5a5   :  { %2357 = vmatmul.mubr.msk.bf16.vlgmr.msra.gmra.mrb[16].mxu0 %vm158_vm1, %v607_v48 }
 0x5a6   :  { %2369 = vmatpush3.bf16.msra.mxu0 %v2889_v36  ;;  %2372 = vmatprep.mubr.msk.bf16.mxu0 %vm2741_vm0, %v2740_v2 }
 0x5a7   :  { %2370 = vmatprep.subr.bf16.mxu0 %v2740_v2 }
 0x5aa   :  { %2371 = vmatpush3.bf16.msra.mxu0 %v2902_v38 }
 0x5ab   :  { %2384 = vmatprep.subr.bf16.mxu0 %v2740_v2 }
 0x668   :  { %v528_v49 = vpop.f32.mrb[12].mxu1 }
 0x669   :  { %v2336_v50 = vpop.f32.mrb[13].mxu1 }
 0x66a   :  { %v531_v51 = vpop.f32.mrb[14].mxu1 }
 0x66b   :  { %v2337_v52 = vpop.f32.mrb[15].mxu1 }
 0x670   :  { %v574_v54 = vpop.f32.mrb[12].mxu0  ;;  %v642_v55 = vpop.f32.mrb[16].mxu1 }
 0x671   :  { %v575_v56 = vadd.f32 %v574_v54, %v528_v49  ;;  %v2344_v57 = vpop.f32.mrb[13].mxu0  ;;  %v2352_v58 = vpop.f32.mrb[17].mxu1 }
 0x672   :  { %v577_v59 = vpop.f32.mrb[14].mxu0  ;;  %v645_v60 = vpop.f32.mrb[18].mxu1 }
 0x673   :  { %v580_v61 = vadd.f32 %v2947_v53, %v575_v56  ;;  %v2345_v62 = vpop.f32.mrb[15].mxu0  ;;  %v2353_v63 = vpop.f32.mrb[19].mxu1 }
 0x675   :  { %2575 = vtanh.f32 %v580_v61  ;;  %v2147_v12 = vmul.f32 -1.442695, %v580_v61 }
 0x678   :  { %v685_v0 = vpop.f32.mrb[16].mxu0 }
 0x679   :  { %v686_v5 = vadd.f32 %v685_v0, %v642_v55  ;;  %v2358_v6 = vpop.f32.mrb[17].mxu0 }
 0x67a   :  { %v688_v7 = vpop.f32.mrb[18].mxu0 }
 0x67b   :  { %v691_v8 = vadd.f32 %v2868_v15, %v686_v5  ;;  %v2359_v9 = vpop.f32.mrb[19].mxu0 }
 0x67d   :  { %2577 = vtanh.f32 %v691_v8  ;;  %v2151_v13 = vmul.f32 -1.442695, %v691_v8 }
 0x67e   :  { %2579 = vpow2.f32 %v2147_v12 }
 0x67f   :  { %v2576_v10 = vpop.eup %2575  ;;  %2581 = vpow2.f32 %v2151_v13 }
 0x680   :  { %590 = vrot.lane.b32.xlu0 %v2576_v10, %s2742_s23 }
 0x687   :  { %v2578_v11 = vpop.eup %2577 }
 0x688   :  { %701 = vrot.lane.b32.xlu1 %v2578_v11, %s2742_s23  ;;  %v2580_v14 = vpop.eup %2579 }
 0x689   :  { %v584_v16 = vadd.f32 1.0, %v2580_v14  ;;  %v2582_v17 = vpop.eup %2581 }
 0x68a   :  { %v695_v18 = vadd.f32 1.0, %v2582_v17 }
 0x68b   :  { %2583 = vrcp.f32 %v584_v16 }
 0x68c   :  { %2585 = vrcp.f32 %v695_v18 }
 0x695   :  { %v2584_v19 = vpop.eup %2583 }
 0x696   :  { %v2586_v22 = vpop.eup %2585  ;;  %v588_v25 = vmul.f32 %v2584_v19, %v2956_v29 }
 0x697   :  { %v699_v28 = vmul.f32 %v2586_v22, %v2960_v32 }
 0x6f2   :  { %v591_v20 = vpop.permute.xlu0 %590 }
 0x6f3   :  { %v593_v21 = vmul.f32 %v2584_v19, %v591_v20 }
 0x6f5   :  { %595 = vrot.lane.b32.xlu0 %v593_v21, %s2743_s24 }
 0x6fa   :  { %v702_v23 = vpop.permute.xlu1 %701 }
 0x6fb   :  { %v704_v24 = vmul.f32 %v2586_v22, %v702_v23 }
 0x6fd   :  { %706 = vrot.lane.b32.xlu1 %v704_v24, %s2743_s24 }
 0x767   :  { %v596_v26 = vpop.permute.xlu0 %595 }
 0x768   :  { %v3003_v27 = vadd.f32 %v596_v26, %v588_v25 }
 0x76a   :  { %2587 = vtanh.f32 %v3003_v27 }
 0x76f   :  { %v707_v30 = vpop.permute.xlu1 %706 }
 0x770   :  { %v3007_v31 = vadd.f32 %v707_v30, %v699_v28 }
 0x772   :  { %2589 = vtanh.f32 %v3007_v31 }
 0x774   :  { %v2588_v35 = vpop.eup %2587 }
 0x775   :  { %601 = vrot.lane.b32.xlu0 %v2588_v35, %s2742_s23 }
 0x77c   :  { %v2590_v39 = vpop.eup %2589 }
 0x77d   :  { %712 = vrot.lane.b32.xlu1 %v2590_v39, %s2742_s23 }
 0x7e7   :  { %v602_v40 = vpop.permute.xlu0 %601 }
 0x7e8   :  { %v604_v29 = vmul.f32 %v2584_v19, %v602_v40 }
 0x7ea   :  { %v717_v41 = vpack.c.bf16 %v604_v29, %v604_v29 }
 0x7ec   :  { %719 = vrot.lane.b32.xlu0 %v717_v41, %s2743_s24 }
 0x7ef   :  { %v713_v42 = vpop.permute.xlu1 %712 }
 0x7f0   :  { %v715_v43 = vmul.f32 %v2586_v22, %v713_v42 }
 0x7f2   :  { %v716_v44 = vpack.c.bf16 %v715_v43, %v715_v43 }
 0x7f4   :  { %765 = vrot.lane.b32.xlu1 %v716_v44, %s2743_s24 }
 0x85e   :  { %v720_v32 = vpop.permute.xlu0 %719 }
 0x85f   :  { %2365 = vmatmul.mubr.msk.bf16.vlgmr.msra.gmra.mrb[20].mxu1 %vm108_vm3, %v720_v32  ;;  %v2162_v32 = vld [vmem:[%s3333_s0 + $0x8] sm:$0x3] }
 0x860   :  { %2377 = vmatpush3.bf16.msra.mxu1 %v2824_v1  ;;  %2380 = vmatprep.mubr.msk.bf16.mxu1 %vm2741_vm0, %v2740_v2 }
 0x861   :  { %2378 = vmatprep.subr.bf16.mxu1 %v2740_v2 }
 0x864   :  { %2379 = vmatpush3.bf16.msra.mxu1 %v2839_v4 }
 0x865   :  { %2390 = vmatprep.subr.bf16.mxu1 %v2740_v2 }
 0x866   :  { %v766_v45 = vpop.permute.xlu1 %765 }
 0x867   :  { %2373 = vmatmul.mubr.msk.bf16.vlgmr.msra.gmra.mrb[20].mxu0 %vm108_vm3, %v766_v45  ;;  %2381 = vmatmul.mubr.msk.bf16.vlgmr.msra.gmra.mrb[24].mxu1 %vm108_vm3, %v766_v45  ;;  %v1067_v45 = vpack.c.bf16 %v2162_v32, %v2162_v32 }
 0x868   :  { %2385 = vmatpush3.bf16.msra.mxu0 %v2831_v3  ;;  %2386 = vmatprep.mubr.msk.bf16.mxu0 %vm2741_vm0, %v2740_v2 }
 0x869   :  { %2391 = vmatpush3.bf16.msra.mxu1 %v2880_v34  ;;  %2394 = vmatprep.mubr.msk.bf16.mxu1 %vm2741_vm0, %v2740_v2 }
 0x86a   :  { %2392 = vmatprep.subr.bf16.mxu1 %v2740_v2  ;;  %2398 = vmatprep.subr.bf16.mxu0 %v2740_v2 }
 0x86d   :  { %2393 = vmatpush3.bf16.msra.mxu1 %v2895_v37 }
 0x86e   :  { %2406 = vmatprep.subr.bf16.mxu1 %v2740_v2 }
 0x86f   :  { %2387 = vmatmul.mubr.msk.bf16.vlgmr.msra.gmra.mrb[24].mxu0 %vm158_vm1, %v837_v46 }
 0x870   :  { %2399 = vmatpush3.bf16.msra.mxu0 %v2889_v36  ;;  %2402 = vmatprep.mubr.msk.bf16.mxu0 %vm2741_vm0, %v2740_v2 }
 0x871   :  { %2400 = vmatprep.subr.bf16.mxu0 %v2740_v2 }
 0x874   :  { %2401 = vmatpush3.bf16.msra.mxu0 %v2902_v38 }
 0x875   :  { %2414 = vmatprep.subr.bf16.mxu0 %v2740_v2 }
 0x932   :  { %v758_v47 = vpop.f32.mrb[20].mxu1 }
 0x933   :  { %v2366_v48 = vpop.f32.mrb[21].mxu1 }
 0x934   :  { %v761_v49 = vpop.f32.mrb[22].mxu1 }
 0x935   :  { %v2367_v50 = vpop.f32.mrb[23].mxu1 }
 0x93a   :  { %v804_v51 = vpop.f32.mrb[20].mxu0  ;;  %v872_v52 = vpop.f32.mrb[24].mxu1 }
 0x93b   :  { %v805_v54 = vadd.f32 %v804_v51, %v758_v47  ;;  %v2374_v55 = vpop.f32.mrb[21].mxu0  ;;  %v2382_v56 = vpop.f32.mrb[25].mxu1 }
 0x93c   :  { %v807_v57 = vpop.f32.mrb[22].mxu0  ;;  %v875_v58 = vpop.f32.mrb[26].mxu1 }
 0x93d   :  { %v810_v59 = vadd.f32 %v2947_v53, %v805_v54  ;;  %v2375_v60 = vpop.f32.mrb[23].mxu0  ;;  %v2383_v61 = vpop.f32.mrb[27].mxu1 }
 0x93f   :  { %2591 = vtanh.f32 %v810_v59  ;;  %v2154_v10 = vmul.f32 -1.442695, %v810_v59 }
 0x942   :  { %v915_v62 = vpop.f32.mrb[24].mxu0 }
 0x943   :  { %v916_v63 = vadd.f32 %v915_v62, %v872_v52  ;;  %v2388_v0 = vpop.f32.mrb[25].mxu0 }
 0x944   :  { %v918_v5 = vpop.f32.mrb[26].mxu0 }
 0x945   :  { %v921_v6 = vadd.f32 %v2868_v15, %v916_v63  ;;  %v2389_v7 = vpop.f32.mrb[27].mxu0 }
 0x947   :  { %2593 = vtanh.f32 %v921_v6  ;;  %v2158_v11 = vmul.f32 -1.442695, %v921_v6 }
 0x948   :  { %2595 = vpow2.f32 %v2154_v10 }
 0x949   :  { %v2592_v8 = vpop.eup %2591  ;;  %2597 = vpow2.f32 %v2158_v11 }
 0x94a   :  { %820 = vrot.lane.b32.xlu0 %v2592_v8, %s2742_s23 }
 0x951   :  { %v2594_v9 = vpop.eup %2593 }
 0x952   :  { %931 = vrot.lane.b32.xlu1 %v2594_v9, %s2742_s23  ;;  %v2596_v12 = vpop.eup %2595 }
 0x953   :  { %v814_v13 = vadd.f32 1.0, %v2596_v12  ;;  %v2598_v14 = vpop.eup %2597 }
 0x954   :  { %v925_v16 = vadd.f32 1.0, %v2598_v14 }
 0x955   :  { %2599 = vrcp.f32 %v814_v13 }
 0x956   :  { %2601 = vrcp.f32 %v925_v16 }
 0x95f   :  { %v2600_v17 = vpop.eup %2599 }
 0x960   :  { %v2602_v20 = vpop.eup %2601  ;;  %v818_v23 = vmul.f32 %v2600_v17, %v3003_v27 }
 0x961   :  { %v929_v26 = vmul.f32 %v2602_v20, %v3007_v31 }
 0x9bc   :  { %v821_v18 = vpop.permute.xlu0 %820 }
 0x9bd   :  { %v823_v19 = vmul.f32 %v2600_v17, %v821_v18 }
 0x9bf   :  { %825 = vrot.lane.b32.xlu0 %v823_v19, %s2743_s24 }
 0x9c4   :  { %v932_v21 = vpop.permute.xlu1 %931 }
 0x9c5   :  { %v934_v22 = vmul.f32 %v2602_v20, %v932_v21 }
 0x9c7   :  { %936 = vrot.lane.b32.xlu1 %v934_v22, %s2743_s24 }
 0xa31   :  { %v826_v24 = vpop.permute.xlu0 %825 }
 0xa32   :  { %v3050_v25 = vadd.f32 %v826_v24, %v818_v23 }
 0xa34   :  { %2603 = vtanh.f32 %v3050_v25 }
 0xa39   :  { %v937_v28 = vpop.permute.xlu1 %936 }
 0xa3a   :  { %v3054_v30 = vadd.f32 %v937_v28, %v929_v26 }
 0xa3c   :  { %2605 = vtanh.f32 %v3054_v30 }
 0xa3e   :  { %v2604_v35 = vpop.eup %2603 }
 0xa3f   :  { %831 = vrot.lane.b32.xlu0 %v2604_v35, %s2742_s23 }
 0xa46   :  { %v2606_v39 = vpop.eup %2605 }
 0xa47   :  { %942 = vrot.lane.b32.xlu1 %v2606_v39, %s2742_s23 }
 0xab1   :  { %v832_v40 = vpop.permute.xlu0 %831 }
 0xab2   :  { %v834_v27 = vmul.f32 %v2600_v17, %v832_v40 }
 0xab4   :  { %v947_v29 = vpack.c.bf16 %v834_v27, %v834_v27 }
 0xab6   :  { %949 = vrot.lane.b32.xlu0 %v947_v29, %s2743_s24 }
 0xab9   :  { %v943_v41 = vpop.permute.xlu1 %942 }
 0xaba   :  { %v945_v42 = vmul.f32 %v2602_v20, %v943_v41 }
 0xabc   :  { %v946_v43 = vpack.c.bf16 %v945_v42, %v945_v42 }
 0xabe   :  { %995 = vrot.lane.b32.xlu1 %v946_v43, %s2743_s24 }
 0xb28   :  { %v950_v31 = vpop.permute.xlu0 %949 }
 0xb29   :  { %2395 = vmatmul.mubr.msk.bf16.vlgmr.msra.gmra.mrb[28].mxu1 %vm108_vm3, %v950_v31 }
 0xb2a   :  { %2407 = vmatpush3.bf16.msra.mxu1 %v2824_v1  ;;  %2410 = vmatprep.mubr.msk.bf16.mxu1 %vm2741_vm0, %v2740_v2 }
 0xb2b   :  { %2408 = vmatprep.subr.bf16.mxu1 %v2740_v2 }
 0xb2e   :  { %2409 = vmatpush3.bf16.msra.mxu1 %v2839_v4 }
 0xb2f   :  { %2420 = vmatprep.subr.bf16.mxu1 %v2740_v2 }
 0xb30   :  { %v996_v44 = vpop.permute.xlu1 %995 }
 0xb31   :  { %2403 = vmatmul.mubr.msk.bf16.vlgmr.msra.gmra.mrb[28].mxu0 %vm108_vm3, %v996_v44  ;;  %2411 = vmatmul.mubr.msk.bf16.vlgmr.msra.gmra.mrb[32].mxu1 %vm108_vm3, %v996_v44 }
 0xb32   :  { %2415 = vmatpush3.bf16.msra.mxu0 %v2831_v3  ;;  %2416 = vmatprep.mubr.msk.bf16.mxu0 %vm2741_vm0, %v2740_v2 }
 0xb33   :  { %2421 = vmatpush3.bf16.msra.mxu1 %v2880_v34  ;;  %2424 = vmatprep.mubr.msk.bf16.mxu1 %vm2741_vm0, %v2740_v2 }
 0xb34   :  { %2422 = vmatprep.subr.bf16.mxu1 %v2740_v2  ;;  %2428 = vmatprep.subr.bf16.mxu0 %v2740_v2 }
 0xb37   :  { %2423 = vmatpush3.bf16.msra.mxu1 %v2895_v37 }
 0xb38   :  { %2436 = vmatprep.subr.bf16.mxu1 %v2740_v2 }
 0xb39   :  { %2417 = vmatmul.mubr.msk.bf16.vlgmr.msra.gmra.mrb[32].mxu0 %vm158_vm1, %v1067_v45 }
 0xb3a   :  { %2429 = vmatpush3.bf16.msra.mxu0 %v2889_v36  ;;  %2432 = vmatprep.mubr.msk.bf16.mxu0 %vm2741_vm0, %v2740_v2 }
 0xb3b   :  { %2430 = vmatprep.subr.bf16.mxu0 %v2740_v2 }
 0xb3e   :  { %2431 = vmatpush3.bf16.msra.mxu0 %v2902_v38 }
 0xb3f   :  { %2444 = vmatprep.subr.bf16.mxu0 %v2740_v2 }
 0xbfc   :  { %v988_v33 = vpop.f32.mrb[28].mxu1 }
 0xbfd   :  { %v2396_v46 = vpop.f32.mrb[29].mxu1 }
 0xbfe   :  { %v991_v47 = vpop.f32.mrb[30].mxu1 }
 0xbff   :  { %v2397_v48 = vpop.f32.mrb[31].mxu1 }
 0xc04   :  { %v1034_v49 = vpop.f32.mrb[28].mxu0  ;;  %v1102_v50 = vpop.f32.mrb[32].mxu1 }
 0xc05   :  { %v1035_v51 = vadd.f32 %v1034_v49, %v988_v33  ;;  %v2404_v52 = vpop.f32.mrb[29].mxu0  ;;  %v2412_v54 = vpop.f32.mrb[33].mxu1 }
 0xc06   :  { %v1037_v55 = vpop.f32.mrb[30].mxu0  ;;  %v1105_v56 = vpop.f32.mrb[34].mxu1 }
 0xc07   :  { %v1040_v57 = vadd.f32 %v2947_v53, %v1035_v51  ;;  %v2405_v58 = vpop.f32.mrb[31].mxu0  ;;  %v2413_v59 = vpop.f32.mrb[35].mxu1 }
 0xc09   :  { %2607 = vtanh.f32 %v1040_v57  ;;  %v2161_v8 = vmul.f32 -1.442695, %v1040_v57 }
 0xc0c   :  { %v1145_v60 = vpop.f32.mrb[32].mxu0 }
 0xc0d   :  { %v1146_v61 = vadd.f32 %v1145_v60, %v1102_v50  ;;  %v2418_v62 = vpop.f32.mrb[33].mxu0 }
 0xc0e   :  { %v1148_v63 = vpop.f32.mrb[34].mxu0 }
 0xc0f   :  { %v1151_v0 = vadd.f32 %v2868_v15, %v1146_v61  ;;  %v2419_v5 = vpop.f32.mrb[35].mxu0 }
 0xc11   :  { %2609 = vtanh.f32 %v1151_v0  ;;  %v2165_v9 = vmul.f32 -1.442695, %v1151_v0 }
 0xc12   :  { %2611 = vpow2.f32 %v2161_v8 }
 0xc13   :  { %v2608_v6 = vpop.eup %2607  ;;  %2613 = vpow2.f32 %v2165_v9 }
 0xc14   :  { %1050 = vrot.lane.b32.xlu0 %v2608_v6, %s2742_s23 }
 0xc1b   :  { %v2610_v7 = vpop.eup %2609 }
 0xc1c   :  { %1161 = vrot.lane.b32.xlu1 %v2610_v7, %s2742_s23  ;;  %v2612_v10 = vpop.eup %2611 }
 0xc1d   :  { %v1044_v11 = vadd.f32 1.0, %v2612_v10  ;;  %v2614_v12 = vpop.eup %2613 }
 0xc1e   :  { %v1155_v13 = vadd.f32 1.0, %v2614_v12 }
 0xc1f   :  { %2615 = vrcp.f32 %v1044_v11 }
 0xc20   :  { %2617 = vrcp.f32 %v1155_v13 }
 0xc29   :  { %v2616_v14 = vpop.eup %2615 }
 0xc2a   :  { %v2618_v18 = vpop.eup %2617  ;;  %v1048_v21 = vmul.f32 %v2616_v14, %v3050_v25 }
 0xc2b   :  { %v1159_v24 = vmul.f32 %v2618_v18, %v3054_v30 }
 0xc86   :  { %v1051_v16 = vpop.permute.xlu0 %1050 }
 0xc87   :  { %v1053_v17 = vmul.f32 %v2616_v14, %v1051_v16 }
 0xc89   :  { %1055 = vrot.lane.b32.xlu0 %v1053_v17, %s2743_s24 }
 0xc8e   :  { %v1162_v19 = vpop.permute.xlu1 %1161 }
 0xc8f   :  { %v1164_v20 = vmul.f32 %v2618_v18, %v1162_v19 }
 0xc91   :  { %1166 = vrot.lane.b32.xlu1 %v1164_v20, %s2743_s24 }
 0xcfb   :  { %v1056_v22 = vpop.permute.xlu0 %1055 }
 0xcfc   :  { %v3097_v23 = vadd.f32 %v1056_v22, %v1048_v21 }
 0xcfe   :  { %2619 = vtanh.f32 %v3097_v23 }
 0xd03   :  { %v1167_v26 = vpop.permute.xlu1 %1166 }
 0xd04   :  { %v3101_v28 = vadd.f32 %v1167_v26, %v1159_v24 }
 0xd06   :  { %2621 = vtanh.f32 %v3101_v28 }
 0xd08   :  { %v2620_v35 = vpop.eup %2619 }
 0xd09   :  { %1061 = vrot.lane.b32.xlu0 %v2620_v35, %s2742_s23 }
 0xd10   :  { %v2622_v39 = vpop.eup %2621 }
 0xd11   :  { %1172 = vrot.lane.b32.xlu1 %v2622_v39, %s2742_s23 }
 0xd7b   :  { %v1062_v40 = vpop.permute.xlu0 %1061 }
 0xd7c   :  { %v1064_v25 = vmul.f32 %v2616_v14, %v1062_v40 }
 0xd7e   :  { %v1177_v27 = vpack.c.bf16 %v1064_v25, %v1064_v25  ;;  %v3159_v25 = vld [vmem:[%s3335_s2] sm:$0xff]  }
 0xd80   :  { %1179 = vrot.lane.b32.xlu0 %v1177_v27, %s2743_s24  ;;  %v3168_v27 = vld [vmem:[%s3335_s2 + $0x8] sm:$0xff]  }
 0xd83   :  { %v1173_v29 = vpop.permute.xlu1 %1172 }
 0xd84   :  { %v1175_v41 = vmul.f32 %v2618_v18, %v1173_v29 }
 0xd86   :  { %v1176_v42 = vpack.c.bf16 %v1175_v41, %v1175_v41  ;;  %v3177_v41 = vld [vmem:[%s3334_s1] sm:$0xff]  }
 0xd88   :  { %1225 = vrot.lane.b32.xlu1 %v1176_v42, %s2743_s24  ;;  %v2176_v42 = vld [vmem:[%s3333_s0 + $0xc] sm:$0x3] }
 0xdf2   :  { %v1180_v30 = vpop.permute.xlu0 %1179 }
 0xdf3   :  { %2425 = vmatmul.mubr.msk.bf16.vlgmr.msra.gmra.mrb[36].mxu1 %vm108_vm3, %v1180_v30  ;;  %v1527_v30 = vpack.c.bf16 %v2176_v42, %v2176_v42 }
 0xdf4   :  { %2437 = vmatpush3.bf16.msra.mxu1 %v2824_v1  ;;  %2440 = vmatprep.mubr.msk.bf16.mxu1 %vm2741_vm0, %v2740_v2  ;;  %v2169_v1 = vld [vmem:[%s3333_s0 + $0xa] sm:$0x3] }
 0xdf5   :  { %2438 = vmatprep.subr.bf16.mxu1 %v2740_v2 }
 0xdf8   :  { %2439 = vmatpush3.bf16.msra.mxu1 %v2839_v4  ;;  %v1297_v4 = vpack.c.bf16 %v2169_v1, %v2169_v1 }
 0xdf9   :  { %2450 = vmatprep.subr.bf16.mxu1 %v2740_v2 }
 0xdfa   :  { %v1226_v43 = vpop.permute.xlu1 %1225 }
 0xdfb   :  { %2433 = vmatmul.mubr.msk.bf16.vlgmr.msra.gmra.mrb[36].mxu0 %vm108_vm3, %v1226_v43  ;;  %2441 = vmatmul.mubr.msk.bf16.vlgmr.msra.gmra.mrb[40].mxu1 %vm108_vm3, %v1226_v43 }
 0xdfc   :  { %2445 = vmatpush3.bf16.msra.mxu0 %v2831_v3  ;;  %2446 = vmatprep.mubr.msk.bf16.mxu0 %vm2741_vm0, %v2740_v2 }
 0xdfd   :  { %2451 = vmatpush3.bf16.msra.mxu1 %v2880_v34  ;;  %2454 = vmatprep.mubr.msk.bf16.mxu1 %vm2741_vm0, %v2740_v2 }
 0xdfe   :  { %2452 = vmatprep.subr.bf16.mxu1 %v2740_v2  ;;  %2458 = vmatprep.subr.bf16.mxu0 %v2740_v2 }
 0xe01   :  { %2453 = vmatpush3.bf16.msra.mxu1 %v2895_v37 }
 0xe02   :  { %2466 = vmatprep.subr.bf16.mxu1 %v2740_v2 }
 0xe03   :  { %2447 = vmatmul.mubr.msk.bf16.vlgmr.msra.gmra.mrb[40].mxu0 %vm158_vm1, %v1297_v4 }
 0xe04   :  { %2459 = vmatpush3.bf16.msra.mxu0 %v2889_v36  ;;  %2462 = vmatprep.mubr.msk.bf16.mxu0 %vm2741_vm0, %v2740_v2 }
 0xe05   :  { %2460 = vmatprep.subr.bf16.mxu0 %v2740_v2 }
 0xe08   :  { %2461 = vmatpush3.bf16.msra.mxu0 %v2902_v38 }
 0xe09   :  { %2474 = vmatprep.subr.bf16.mxu0 %v2740_v2 }
 0xec6   :  { %v1218_v3 = vpop.f32.mrb[36].mxu1 }
 0xec7   :  { %v2426_v31 = vpop.f32.mrb[37].mxu1 }
 0xec8   :  { %v1221_v44 = vpop.f32.mrb[38].mxu1 }
 0xec9   :  { %v2427_v32 = vpop.f32.mrb[39].mxu1 }
 0xece   :  { %v1264_v45 = vpop.f32.mrb[36].mxu0  ;;  %v1332_v33 = vpop.f32.mrb[40].mxu1 }
 0xecf   :  { %v1265_v46 = vadd.f32 %v1264_v45, %v1218_v3  ;;  %v2434_v47 = vpop.f32.mrb[37].mxu0  ;;  %v2442_v48 = vpop.f32.mrb[41].mxu1 }
 0xed0   :  { %v1267_v49 = vpop.f32.mrb[38].mxu0  ;;  %v1335_v50 = vpop.f32.mrb[42].mxu1 }
 0xed1   :  { %v1270_v51 = vadd.f32 %v2947_v53, %v1265_v46  ;;  %v2435_v52 = vpop.f32.mrb[39].mxu0  ;;  %v2443_v54 = vpop.f32.mrb[43].mxu1 }
 0xed3   :  { %2623 = vtanh.f32 %v1270_v51  ;;  %v2168_v63 = vmul.f32 -1.442695, %v1270_v51  ;;  %v3203_v51 = vld [vmem:[%s3336_s3] ss:$0 sm:$0xff] }
 0xed6   :  { %v1375_v55 = vpop.f32.mrb[40].mxu0 }
 0xed7   :  { %v1376_v56 = vadd.f32 %v1375_v55, %v1332_v33  ;;  %v2448_v57 = vpop.f32.mrb[41].mxu0 }
 0xed8   :  { %v1378_v58 = vpop.f32.mrb[42].mxu0 }
 0xed9   :  { %v1381_v59 = vadd.f32 %v2868_v15, %v1376_v56  ;;  %v2449_v60 = vpop.f32.mrb[43].mxu0 }
 0xedb   :  { %2625 = vtanh.f32 %v1381_v59  ;;  %v2172_v0 = vmul.f32 -1.442695, %v1381_v59 }
 0xedc   :  { %2627 = vpow2.f32 %v2168_v63 }
 0xedd   :  { %v2624_v61 = vpop.eup %2623  ;;  %2629 = vpow2.f32 %v2172_v0 }
 0xede   :  { %1280 = vrot.lane.b32.xlu0 %v2624_v61, %s2742_s23 }
 0xee5   :  { %v2626_v62 = vpop.eup %2625 }
 0xee6   :  { %1391 = vrot.lane.b32.xlu1 %v2626_v62, %s2742_s23  ;;  %v2628_v5 = vpop.eup %2627 }
 0xee7   :  { %v1274_v6 = vadd.f32 1.0, %v2628_v5  ;;  %v2630_v7 = vpop.eup %2629 }
 0xee8   :  { %v1385_v8 = vadd.f32 1.0, %v2630_v7 }
 0xee9   :  { %2631 = vrcp.f32 %v1274_v6 }
 0xeea   :  { %2633 = vrcp.f32 %v1385_v8 }
 0xef3   :  { %v2632_v9 = vpop.eup %2631 }
 0xef4   :  { %v2634_v11 = vpop.eup %2633  ;;  %v1278_v14 = vmul.f32 %v2632_v9, %v3097_v23 }
 0xef5   :  { %v1389_v18 = vmul.f32 %v2634_v11, %v3101_v28 }
 0xf50   :  { %v1281_v15 = vpop.permute.xlu0 %1280 }
 0xf51   :  { %v1283_v10 = vmul.f32 %v2632_v9, %v1281_v15 }
 0xf53   :  { %1285 = vrot.lane.b32.xlu0 %v1283_v10, %s2743_s24 }
 0xf58   :  { %v1392_v12 = vpop.permute.xlu1 %1391 }
 0xf59   :  { %v1394_v13 = vmul.f32 %v2634_v11, %v1392_v12 }
 0xf5b   :  { %1396 = vrot.lane.b32.xlu1 %v1394_v13, %s2743_s24 }
 0xfc5   :  { %v1286_v16 = vpop.permute.xlu0 %1285 }
 0xfc6   :  { %v3144_v17 = vadd.f32 %v1286_v16, %v1278_v14 }
 0xfc8   :  { %2635 = vtanh.f32 %v3144_v17 }
 0xfcd   :  { %v1397_v19 = vpop.permute.xlu1 %1396 }
 0xfce   :  { %v3148_v20 = vadd.f32 %v1397_v19, %v1389_v18 }
 0xfd0   :  { %2637 = vtanh.f32 %v3148_v20 }
 0xfd2   :  { %v2636_v21 = vpop.eup %2635 }
 0xfd3   :  { %1291 = vrot.lane.b32.xlu0 %v2636_v21, %s2742_s23 }
 0xfda   :  { %v2638_v22 = vpop.eup %2637 }
 0xfdb   :  { %1402 = vrot.lane.b32.xlu1 %v2638_v22, %s2742_s23 }
0x1045   :  { %v1292_v24 = vpop.permute.xlu0 %1291 }
0x1046   :  { %v1294_v23 = vmul.f32 %v2632_v9, %v1292_v24 }
0x1048   :  { %v1407_v26 = vpack.c.bf16 %v1294_v23, %v1294_v23  ;;  %v2183_v23 = vld [vmem:[%s3333_s0 + $0xe] sm:$0x3] }
0x104a   :  { %1409 = vrot.lane.b32.xlu0 %v1407_v26, %s2743_s24  ;;  %v2687_v26 = vld [vmem:[%s3338_s5] sm:$0xff]  }
0x104d   :  { %v1403_v35 = vpop.permute.xlu1 %1402 }
0x104e   :  { %v1405_v39 = vmul.f32 %v2634_v11, %v1403_v35  ;;  %v1757_v35 = vpack.c.bf16 %v2183_v23, %v2183_v23 }
0x1050   :  { %v1406_v40 = vpack.c.bf16 %v1405_v39, %v1405_v39  ;;  %v2688_v39 = vld [vmem:[%s3338_s5 + $0x8] sm:$0xff]  }
0x1052   :  { %1455 = vrot.lane.b32.xlu1 %v1406_v40, %s2743_s24  ;;  %v2689_v40 = vld [vmem:[%s3337_s4] sm:$0xff]  }
0x10bc   :  { %v1410_v28 = vpop.permute.xlu0 %1409 }
0x10bd   :  { %2455 = vmatmul.mubr.msk.bf16.vlgmr.msra.gmra.mrb[44].mxu1 %vm108_vm3, %v1410_v28  ;;  %v2690_v28 = vld [vmem:[%s3337_s4 + $0x8] sm:$0xff]  }
0x10be   :  { %2467 = vmatpush3.bf16.msra.mxu1 %v3159_v25  ;;  %2470 = vmatprep.mubr.msk.bf16.mxu1 %vm2741_vm0, %v2740_v2 }
0x10bf   :  { %2468 = vmatprep.subr.bf16.mxu1 %v2740_v2 }
0x10c2   :  { %2469 = vmatpush3.bf16.msra.mxu1 %v3168_v27 }
0x10c3   :  { %2480 = vmatprep.subr.bf16.mxu1 %v2740_v2 }
0x10c4   :  { %v1456_v29 = vpop.permute.xlu1 %1455 }
0x10c5   :  { %2463 = vmatmul.mubr.msk.bf16.vlgmr.msra.gmra.mrb[44].mxu0 %vm108_vm3, %v1456_v29  ;;  %2471 = vmatmul.mubr.msk.bf16.vlgmr.msra.gmra.mrb[48].mxu1 %vm108_vm3, %v1456_v29 }
0x10c6   :  { %2475 = vmatpush3.bf16.msra.mxu0 %v3177_v41  ;;  %2476 = vmatprep.mubr.msk.bf16.mxu0 %vm2741_vm0, %v2740_v2 }
0x10c7   :  { %2481 = vmatpush3.bf16.msra.mxu1 %v2880_v34  ;;  %2484 = vmatprep.mubr.msk.bf16.mxu1 %vm2741_vm0, %v2740_v2 }
0x10c8   :  { %2482 = vmatprep.subr.bf16.mxu1 %v2740_v2  ;;  %2488 = vmatprep.subr.bf16.mxu0 %v2740_v2 }
0x10cb   :  { %2483 = vmatpush3.bf16.msra.mxu1 %v2895_v37 }
0x10cc   :  { %2496 = vmatprep.subr.bf16.mxu1 %v2740_v2 }
0x10cd   :  { %2477 = vmatmul.mubr.msk.bf16.vlgmr.msra.gmra.mrb[48].mxu0 %vm158_vm1, %v1527_v30 }
0x10ce   :  { %2489 = vmatpush3.bf16.msra.mxu0 %v2889_v36  ;;  %2492 = vmatprep.mubr.msk.bf16.mxu0 %vm2741_vm0, %v2740_v2 }
0x10cf   :  { %2490 = vmatprep.subr.bf16.mxu0 %v2740_v2 }
0x10d2   :  { %2491 = vmatpush3.bf16.msra.mxu0 %v2902_v38 }
0x10d3   :  { %2504 = vmatprep.subr.bf16.mxu0 %v2740_v2 }
0x1190   :  { %v1448_v34 = vpop.f32.mrb[44].mxu1 }
0x1191   :  { %v2456_v43 = vpop.f32.mrb[45].mxu1 }
0x1192   :  { %v1451_v1 = vpop.f32.mrb[46].mxu1 }
0x1193   :  { %v2457_v4 = vpop.f32.mrb[47].mxu1 }
0x1198   :  { %v1494_v37 = vpop.f32.mrb[44].mxu0  ;;  %v1562_v3 = vpop.f32.mrb[48].mxu1 }
0x1199   :  { %v1495_v31 = vadd.f32 %v1494_v37, %v1448_v34  ;;  %v2464_v44 = vpop.f32.mrb[45].mxu0  ;;  %v2472_v32 = vpop.f32.mrb[49].mxu1 }
0x119a   :  { %v1497_v45 = vpop.f32.mrb[46].mxu0  ;;  %v1565_v36 = vpop.f32.mrb[50].mxu1 }
0x119b   :  { %v1500_v33 = vadd.f32 %v2947_v53, %v1495_v31  ;;  %v2465_v46 = vpop.f32.mrb[47].mxu0  ;;  %v2473_v47 = vpop.f32.mrb[51].mxu1 }
0x119d   :  { %2639 = vtanh.f32 %v1500_v33  ;;  %v2175_v56 = vmul.f32 -1.442695, %v1500_v33 }
0x11a0   :  { %v1605_v48 = vpop.f32.mrb[48].mxu0 }
0x11a1   :  { %v1606_v38 = vadd.f32 %v1605_v48, %v1562_v3  ;;  %v2478_v49 = vpop.f32.mrb[49].mxu0  ;;  %v3261_v3 = vld [vmem:[%s3339_s6] ss:$0 sm:$0xff] }
0x11a2   :  { %v1608_v50 = vpop.f32.mrb[50].mxu0 }
0x11a3   :  { %v1611_v52 = vadd.f32 %v3203_v51, %v1606_v38  ;;  %v2479_v54 = vpop.f32.mrb[51].mxu0 }
0x11a5   :  { %2641 = vtanh.f32 %v1611_v52  ;;  %v2179_v57 = vmul.f32 -1.442695, %v1611_v52 }
0x11a6   :  { %2643 = vpow2.f32 %v2175_v56 }
0x11a7   :  { %v2640_v55 = vpop.eup %2639  ;;  %2645 = vpow2.f32 %v2179_v57 }
0x11a8   :  { %1510 = vrot.lane.b32.xlu0 %v2640_v55, %s2742_s23 }
0x11af   :  { %v2642_v53 = vpop.eup %2641 }
0x11b0   :  { %1621 = vrot.lane.b32.xlu1 %v2642_v53, %s2742_s23  ;;  %v2644_v58 = vpop.eup %2643 }
0x11b1   :  { %v1504_v59 = vadd.f32 1.0, %v2644_v58  ;;  %v2646_v60 = vpop.eup %2645 }
0x11b2   :  { %v1615_v61 = vadd.f32 1.0, %v2646_v60 }
0x11b3   :  { %2647 = vrcp.f32 %v1504_v59 }
0x11b4   :  { %2649 = vrcp.f32 %v1615_v61 }
0x11bd   :  { %v2648_v62 = vpop.eup %2647 }
0x11be   :  { %v2650_v5 = vpop.eup %2649  ;;  %v1508_v8 = vmul.f32 %v2648_v62, %v3144_v17 }
0x11bf   :  { %v1619_v10 = vmul.f32 %v2650_v5, %v3148_v20 }
0x121a   :  { %v1511_v63 = vpop.permute.xlu0 %1510 }
0x121b   :  { %v1513_v0 = vmul.f32 %v2648_v62, %v1511_v63 }
0x121d   :  { %1515 = vrot.lane.b32.xlu0 %v1513_v0, %s2743_s24 }
0x1222   :  { %v1622_v6 = vpop.permute.xlu1 %1621 }
0x1223   :  { %v1624_v7 = vmul.f32 %v2650_v5, %v1622_v6 }
0x1225   :  { %1626 = vrot.lane.b32.xlu1 %v1624_v7, %s2743_s24 }
0x128f   :  { %v1516_v9 = vpop.permute.xlu0 %1515 }
0x1290   :  { %v3211_v15 = vadd.f32 %v1516_v9, %v1508_v8 }
0x1292   :  { %2651 = vtanh.f32 %v3211_v15 }
0x1297   :  { %v1627_v11 = vpop.permute.xlu1 %1626 }
0x1298   :  { %v3215_v12 = vadd.f32 %v1627_v11, %v1619_v10 }
0x129a   :  { %2653 = vtanh.f32 %v3215_v12 }
0x129c   :  { %v2652_v13 = vpop.eup %2651 }
0x129d   :  { %1521 = vrot.lane.b32.xlu0 %v2652_v13, %s2742_s23 }
0x12a4   :  { %v2654_v14 = vpop.eup %2653 }
0x12a5   :  { %1632 = vrot.lane.b32.xlu1 %v2654_v14, %s2742_s23 }
0x130f   :  { %v1522_v16 = vpop.permute.xlu0 %1521 }
0x1310   :  { %v1524_v17 = vmul.f32 %v2648_v62, %v1522_v16 }
0x1312   :  { %v1637_v18 = vpack.c.bf16 %v1524_v17, %v1524_v17 }
0x1314   :  { %1639 = vrot.lane.b32.xlu0 %v1637_v18, %s2743_s24 }
0x1317   :  { %v1633_v19 = vpop.permute.xlu1 %1632 }
0x1318   :  { %v1635_v21 = vmul.f32 %v2650_v5, %v1633_v19 }
0x131a   :  { %v1636_v22 = vpack.c.bf16 %v1635_v21, %v1635_v21 }
0x131c   :  { %1685 = vrot.lane.b32.xlu1 %v1636_v22, %s2743_s24 }
0x1386   :  { %v1640_v20 = vpop.permute.xlu0 %1639 }
0x1387   :  { %2485 = vmatmul.mubr.msk.bf16.vlgmr.msra.gmra.mrb[52].mxu1 %vm108_vm3, %v1640_v20 }
0x1388   :  { %2497 = vmatpush3.bf16.msra.mxu1 %v3159_v25  ;;  %2500 = vmatprep.mubr.msk.bf16.mxu1 %vm2741_vm0, %v2740_v2 }
0x1389   :  { %2498 = vmatprep.subr.bf16.mxu1 %v2740_v2 }
0x138c   :  { %2499 = vmatpush3.bf16.msra.mxu1 %v3168_v27 }
0x138d   :  { %2510 = vmatprep.subr.bf16.mxu1 %v2740_v2 }
0x138e   :  { %v1686_v24 = vpop.permute.xlu1 %1685 }
0x138f   :  { %2493 = vmatmul.mubr.msk.bf16.vlgmr.msra.gmra.mrb[52].mxu0 %vm108_vm3, %v1686_v24  ;;  %2501 = vmatmul.mubr.msk.bf16.vlgmr.msra.gmra.mrb[56].mxu1 %vm108_vm3, %v1686_v24 }
0x1390   :  { %2505 = vmatpush3.bf16.msra.mxu0 %v3177_v41  ;;  %2506 = vmatprep.mubr.msk.bf16.mxu0 %vm2741_vm0, %v2740_v2 }
0x1391   :  { %2511 = vmatpush3.bf16.msra.mxu1 %v2687_v26  ;;  %2514 = vmatprep.mubr.msk.bf16.mxu1 %vm2741_vm0, %v2740_v2 }
0x1392   :  { %2512 = vmatprep.subr.bf16.mxu1 %v2740_v2  ;;  %2518 = vmatprep.subr.bf16.mxu0 %v2740_v2 }
0x1395   :  { %2513 = vmatpush3.bf16.msra.mxu1 %v2688_v39 }
0x1396   :  { %2526 = vmatprep.subr.bf16.mxu1 %v2740_v2 }
0x1397   :  { %2507 = vmatmul.mubr.msk.bf16.vlgmr.msra.gmra.mrb[56].mxu0 %vm158_vm1, %v1757_v35 }
0x1398   :  { %2519 = vmatpush3.bf16.msra.mxu0 %v2689_v40  ;;  %2522 = vmatprep.mubr.msk.bf16.mxu0 %vm2741_vm0, %v2740_v2 }
0x1399   :  { %2520 = vmatprep.subr.bf16.mxu0 %v2740_v2 }
0x139c   :  { %2521 = vmatpush3.bf16.msra.mxu0 %v2690_v28 }
0x145a   :  { %v1678_v25 = vpop.f32.mrb[52].mxu1 }
0x145b   :  { %v2486_v27 = vpop.f32.mrb[53].mxu1 }
0x145c   :  { %v1681_v29 = vpop.f32.mrb[54].mxu1 }
0x145d   :  { %v2487_v41 = vpop.f32.mrb[55].mxu1 }
0x1462   :  { %v1724_v42 = vpop.f32.mrb[52].mxu0  ;;  %v1792_v30 = vpop.f32.mrb[56].mxu1 }
0x1463   :  { %v1725_v34 = vadd.f32 %v1724_v42, %v1678_v25  ;;  %v2494_v43 = vpop.f32.mrb[53].mxu0  ;;  %v2502_v1 = vpop.f32.mrb[57].mxu1 }
0x1464   :  { %v1727_v4 = vpop.f32.mrb[54].mxu0  ;;  %v1795_v37 = vpop.f32.mrb[58].mxu1 }
0x1465   :  { %v1730_v31 = vadd.f32 %v3261_v3, %v1725_v34  ;;  %v2495_v44 = vpop.f32.mrb[55].mxu0  ;;  %v2503_v32 = vpop.f32.mrb[59].mxu1  ;;  %v2549_v4 = vld [vmem:[%s3342_s9] sm:$0xff]   ;;  %v2550_v37 = vld [vmem:[%s3342_s9 + $0x8] sm:$0xff]   ;;  %s2745_s9 = smov [#allocation5]  }
0x1466   :  { %s2097_s14 = sshll.u32 %s2745_s9, 4  ;;  %s2098_s14 = int_to_ptr.vmem [resolvable:$true] %s2097_s14 }
0x1467   :  { %2655 = vtanh.f32 %v1730_v31  ;;  %v2182_v50 = vmul.f32 -1.442695, %v1730_v31  ;;  %s2692_s16 = scalar_lea.vmem %s2098_s14, 64  ;;  %p2697_p1 = scmp.lt.s32.totalorder %s2098_s14, %s2098_s14 }
0x1468   :  { %p2693_p0 = scmp.ne.s32.totalorder %s2098_s14, %s2692_s16  ;;  %p2698_p2 = scmp.lt.s32.totalorder %s2692_s16, %s2692_s16 }
0x146a   :  { %v1835_v45 = vpop.f32.mrb[56].mxu0  ;;  %p2699_p3 = por %p2698_p2, %p2697_p1 }
0x146b   :  { %v1836_v36 = vadd.f32 %v1835_v45, %v1792_v30  ;;  %v2508_v33 = vpop.f32.mrb[57].mxu0 }
0x146c   :  { %v1838_v46 = vpop.f32.mrb[58].mxu0  ;;  %p2700_p4 = pnand %p2699_p3, %p2693_p0 }
0x146d   :  { %v1841_v47 = vadd.f32 %v3203_v51, %v1836_v36  ;;  %v2509_v48 = vpop.f32.mrb[59].mxu0 }
0x146f   :  { %2657 = vtanh.f32 %v1841_v47  ;;  %v2186_v52 = vmul.f32 -1.442695, %v1841_v47 }
0x1470   :  { %2659 = vpow2.f32 %v2182_v50 }
0x1471   :  { %v2656_v38 = vpop.eup %2655  ;;  %2661 = vpow2.f32 %v2186_v52 }
0x1472   :  { %1740 = vrot.lane.b32.xlu0 %v2656_v38, %s2742_s23 }
0x1479   :  { %v2658_v49 = vpop.eup %2657 }
0x147a   :  { %1851 = vrot.lane.b32.xlu1 %v2658_v49, %s2742_s23  ;;  %v2660_v54 = vpop.eup %2659 }
0x147b   :  { %v1734_v55 = vadd.f32 1.0, %v2660_v54  ;;  %v2662_v53 = vpop.eup %2661 }
0x147c   :  { %v1845_v56 = vadd.f32 1.0, %v2662_v53 }
0x147d   :  { %2663 = vrcp.f32 %v1734_v55 }
0x147e   :  { %2665 = vrcp.f32 %v1845_v56 }
0x1487   :  { %v2664_v57 = vpop.eup %2663 }
0x1488   :  { %v2666_v59 = vpop.eup %2665  ;;  %v1738_v62 = vmul.f32 %v2664_v57, %v3211_v15 }
0x1489   :  { %v1849_v5 = vmul.f32 %v2666_v59, %v3215_v12 }
0x14e4   :  { %v1741_v51 = vpop.permute.xlu0 %1740 }
0x14e5   :  { %v1743_v58 = vmul.f32 %v2664_v57, %v1741_v51 }
0x14e7   :  { %1745 = vrot.lane.b32.xlu0 %v1743_v58, %s2743_s24 }
0x14ec   :  { %v1852_v60 = vpop.permute.xlu1 %1851 }
0x14ed   :  { %v1854_v61 = vmul.f32 %v2666_v59, %v1852_v60 }
0x14ef   :  { %1856 = vrot.lane.b32.xlu1 %v1854_v61, %s2743_s24 }
0x1559   :  { %v1746_v63 = vpop.permute.xlu0 %1745 }
0x155a   :  { %v1748_v0 = vadd.f32 %v1746_v63, %v1738_v62 }
0x155c   :  { %2667 = vtanh.f32 %v1748_v0 }
0x1561   :  { %v1857_v6 = vpop.permute.xlu1 %1856 }
0x1562   :  { %v1859_v7 = vadd.f32 %v1857_v6, %v1849_v5 }
0x1564   :  { %2669 = vtanh.f32 %v1859_v7 }
0x1566   :  { %v2668_v8 = vpop.eup %2667 }
0x1567   :  { %1751 = vrot.lane.b32.xlu0 %v2668_v8, %s2742_s23 }
0x156e   :  { %v2670_v9 = vpop.eup %2669 }
0x156f   :  { %1862 = vrot.lane.b32.xlu1 %v2670_v9, %s2742_s23 }
0x15d9   :  { %v1752_v10 = vpop.permute.xlu0 %1751 }
0x15da   :  { %v1754_v11 = vmul.f32 %v2664_v57, %v1752_v10 }
0x15dc   :  { %v1867_v13 = vpack.c.bf16 %v1754_v11, %v1754_v11 }
0x15de   :  { %1869 = vrot.lane.b32.xlu0 %v1867_v13, %s2743_s24 }
0x15e1   :  { %v1863_v15 = vpop.permute.xlu1 %1862 }
0x15e2   :  { %v1865_v14 = vmul.f32 %v2666_v59, %v1863_v15 }
0x15e4   :  { %v1866_v16 = vpack.c.bf16 %v1865_v14, %v1865_v14 }
0x15e6   :  { %1915 = vrot.lane.b32.xlu1 %v1866_v16, %s2743_s24 }
0x1650   :  { %v1870_v12 = vpop.permute.xlu0 %1869 }
0x1651   :  { %2515 = vmatmul.mubr.msk.bf16.vlgmr.msra.gmra.mrb[60].mxu1 %vm108_vm3, %v1870_v12 }
0x1652   :  { %2530 = vmatprep.mubr.msk.bf16.mxu1 %vm2741_vm0, %v2740_v2  ;;  %2527 = vmatpush3.bf16.msra.mxu1 %v2549_v4 }
0x1653   :  { %2528 = vmatprep.subr.bf16.mxu1 %v2740_v2 }
0x1656   :  { %2529 = vmatpush3.bf16.msra.mxu1 %v2550_v37 }
0x1658   :  { %v1916_v17 = vpop.permute.xlu1 %1915 }
0x1659   :  { %2523 = vmatmul.mubr.msk.bf16.vlgmr.msra.gmra.mrb[60].mxu0 %vm108_vm3, %v1916_v17 }
0x1724   :  { %v1908_v18 = vpop.f32.mrb[60].mxu1 }
0x1725   :  { %v2516_v19 = vpop.f32.mrb[61].mxu1 }
0x1726   :  { %v1911_v21 = vpop.f32.mrb[62].mxu1 }
0x1727   :  { %v2517_v22 = vpop.f32.mrb[63].mxu1 }
0x172c   :  { %v1954_v20 = vpop.f32.mrb[60].mxu0 }
0x172d   :  { %v1955_v24 = vadd.f32 %v1954_v20, %v1908_v18  ;;  %v2524_v23 = vpop.f32.mrb[61].mxu0 }
0x172e   :  { %v1957_v26 = vpop.f32.mrb[62].mxu0 }
0x172f   :  { %v1960_v35 = vadd.f32 %v3261_v3, %v1955_v24  ;;  %v2525_v39 = vpop.f32.mrb[63].mxu0 }
0x1731   :  { %2671 = vtanh.f32 %v1960_v35  ;;  %v2189_v28 = vmul.f32 -1.442695, %v1960_v35 }
0x1733   :  { %2673 = vpow2.f32 %v2189_v28 }
0x173b   :  { %v2672_v40 = vpop.eup %2671 }
0x173c   :  { %1970 = vrot.lane.b32.xlu0 %v2672_v40, %s2742_s23 }
0x173d   :  { %v2674_v25 = vpop.eup %2673 }
0x173e   :  { %v1964_v27 = vadd.f32 1.0, %v2674_v25 }
0x1740   :  { %2675 = vrcp.f32 %v1964_v27 }
0x174a   :  { %v2676_v29 = vpop.eup %2675 }
0x174b   :  { %v1968_v30 = vmul.f32 %v2676_v29, %v1748_v0 }
0x17ae   :  { %v1971_v41 = vpop.permute.xlu0 %1970 }
0x17af   :  { %v1973_v42 = vmul.f32 %v2676_v29, %v1971_v41 }
0x17b1   :  { %1975 = vrot.lane.b32.xlu1 %v1973_v42, %s2743_s24 }
0x1823   :  { %v1976_v34 = vpop.permute.xlu1 %1975 }
0x1824   :  { %v1978_v43 = vadd.f32 %v1976_v34, %v1968_v30 }
0x1826   :  { %2677 = vtanh.f32 %v1978_v43 }
0x1830   :  { %v2678_v1 = vpop.eup %2677 }
0x1831   :  { %1981 = vrot.lane.b32.xlu0 %v2678_v1, %s2742_s23  ;;  %s2744_s23 = smov 96  }
0x1835   :  { %1986 = vrot.lane.b32.xlu0 %v1865_v14, %s2743_s24 }
0x18a3   :  { %v1982_v3 = vpop.permute.xlu0 %1981 }
0x18a4   :  { %v1984_v31 = vmul.f32 %v2676_v29, %v1982_v3 }
0x18a6   :  { %v2012_v44 = vpack.c.bf16 %v1984_v31, %v1984_v31  ;;  %1999 = vrot.lane.b32.xlu0 %v1984_v31, %s2743_s24 }
0x18a7   :  { %v1987_v32 = vpop.permute.xlu0 %1986 }
0x18a8   :  { %1990 = vst.msk [vmem:[#allocation2] sm:$0x3] %vm52_vm2, %v1987_v32  ;;  %1996 = vst.msk [vmem:[#allocation5] sm:$0x3] %vm52_vm2, %v1987_v32  ;;  %2025 = vrot.lane.b32.xlu1 %v2012_v44, %s2743_s24 }
0x18ac   :  { %1992 = vrot.lane.b32.xlu1 %v1859_v7, %s2744_s23 }
0x18b0   :  { %2004 = vrot.lane.b32.xlu1 %v1978_v43, %s2744_s23 }
0x1918   :  { %v2000_v45 = vpop.permute.xlu0 %1999 }
0x1919   :  { %2002 = vst.msk [vmem:[#allocation2 + $0x2] sm:$0x3] %vm52_vm2, %v2000_v45  ;;  %2009 = vst.msk [vmem:[#allocation5 + $0x2] sm:$0x3] %vm52_vm2, %v2000_v45 }
0x191a   :  { %v2026_v2 = vpop.permute.xlu1 %2025 }
0x191b   :  { %2531 = vmatmul.mubr.msk.bf16.vlgmr.msra.gmra.mrb[64].mxu1 %vm108_vm3, %v2026_v2 }
0x191e   :  { %v1993_v36 = vpop.permute.xlu1 %1992 }
0x191f   :  { %1995 = vst.msk [vmem:[#allocation3] sm:$0x3] %vm52_vm2, %v1993_v36  ;;  %1997 = vst.msk [vmem:[#allocation7] sm:$0x3] %vm52_vm2, %v1993_v36 }
0x1922   :  { %v2005_v33 = vpop.permute.xlu1 %2004 }
0x1923   :  { %2007 = vst.msk [vmem:[#allocation3 + $0x2] sm:$0x3] %vm52_vm2, %v2005_v33  ;;  %2011 = vst.msk [vmem:[#allocation7 + $0x2] sm:$0x3] %vm52_vm2, %v2005_v33 }
0x1924   :  { %2703 = shalt.err (!%p2700_p4)
}
0x1925   :  { %s2704_s18 = scalar_lea.hbm %s3345_s12, 64 }
0x1926   :  { %p2705_p5 = scmp.ne.s32.totalorder %s3345_s12, %s2704_s18  ;;  %p2708_p6 = scmp.lt.u32.totalorder %s2704_s18, %s3345_s12 }
0x1928   :  { %p2710_p7 = pnand %p2708_p6, %p2705_p5 }
0x192a   :  { %2713 = shalt.err (!%p2710_p7)
}
0x192b   :  { %s2747_s21 = smov 2   ;;  %s2714_s25 = scalar_lea.vmem %s2110_s7, 64 }
0x192c   :  { %2103 = dma.vmem_to_hbm [thread:$0]  %s2098_s14, 64, %s3345_s12, [#allocation6], %s2743_s24, %s2743_s24, %s2747_s21  }
0x192d   :  { %p2715_p8 = scmp.ne.s32.totalorder %s2110_s7, %s2714_s25  ;;  %p2719_p9 = scmp.lt.s32.totalorder %s2110_s7, %s2110_s7 }
0x192e   :  { %p2720_p10 = scmp.lt.s32.totalorder %s2714_s25, %s2714_s25 }
0x1930   :  { %p2721_p11 = por %p2720_p10, %p2719_p9 }
0x1932   :  { %p2722_p12 = pnand %p2721_p11, %p2715_p8 }
0x1934   :  { %2725 = shalt.err (!%p2722_p12)
}
0x1935   :  { %s2726_s27 = scalar_lea.hbm %s3346_s13, 64 }
0x1936   :  { %p2727_p13 = scmp.ne.s32.totalorder %s3346_s13, %s2726_s27  ;;  %p2730_p0 = scmp.lt.u32.totalorder %s2726_s27, %s3346_s13 }
0x1938   :  { %p2732_p1 = pnand %p2730_p0, %p2727_p13 }
0x193a   :  { %2735 = shalt.err (!%p2732_p1)
}
0x193b   :  { %2115 = dma.vmem_to_hbm [thread:$0]  %s2110_s7, 64, %s3346_s13, [#allocation8], %s2743_s24, %s2743_s24, %s2747_s21   ;;  %v2190_v46 = vld [vmem:[#allocation4] ss:$0 sm:$0xff]  ;;  %vm2088_vm4 = vcmask 1024  }
0x19ee   :  { %v2076_v47 = vpop.f32.mrb[64].mxu1 }
0x19ef   :  { %v2077_v48 = vadd.f32 %v2190_v46, %v2076_v47  ;;  %v2532_v38 = vpop.f32.mrb[65].mxu1 }
0x19f0   :  { %v2079_v49 = vpop.f32.mrb[66].mxu1 }
0x19f1   :  { %v2194_v50 = vmul.f32 -1.442695, %v2077_v48  ;;  %v2533_v52 = vpop.f32.mrb[67].mxu1 }
0x19f3   :  { %2679 = vpow2.f32 %v2194_v50 }
0x19fd   :  { %v2680_v54 = vpop.eup %2679 }
0x19fe   :  { %v2085_v55 = vadd.f32 1.0, %v2680_v54 }
0x1a00   :  { %2681 = vrcp.f32 %v2085_v55 }
0x1a0a   :  { %v2682_v53 = vpop.eup %2681 }
0x1a0b   :  { %2089 = vst.msk [vmem:[%s3344_s11] sm:$0x3] %vm2088_vm4, %v2682_v53 }
0x1a0c   :  { %2736 = dma.done.wait [#allocation6], 64  }
0x1a0d   :  { %2737 = vsyncadd [#allocation6], 4294967232 }
0x1a0e   :  { %2738 = dma.done.wait [#allocation8], 64  }
0x1a0f   :  { %2739 = vsyncadd [#allocation8], 4294967232 }
0x1a10   :  { %2124 = vsyncpa [#allocation6], 1 }
0x1a11   :  { %2125 = vsyncpa [#allocation8], 1 }

</bundles_post_ra>
